<compile_context>
chip_gen: v5e
topology: v5e:2x2
jax: 0.10.0
libtpu: 0.0.40
codegen_flags: <defaults>
</compile_context>

<pallas_src>
import functools

import jax
import jax.numpy as jnp
from jax.experimental import pallas as pl
from jax.experimental.pallas import tpu as pltpu


def _round_up(x, m):
    return (x + m - 1) // m * m


# ---------------------------------------------------------------------------
# Pallas kernel 1: fused 1x1 convolutions (g / theta / phi share the input).
# ---------------------------------------------------------------------------
def _pointwise_conv_kernel(x_ref, w_ref, b_ref, o_ref):
    # x_ref: (TP, Cin)  w_ref: (Cin, CoutPad)  b_ref: (1, CoutPad)  o_ref: (TP, CoutPad)
    acc = jnp.dot(x_ref[...], w_ref[...], preferred_element_type=jnp.float32)
    o_ref[...] = (acc + b_ref[...]).astype(o_ref.dtype)


def pointwise_conv(x_flat, w_t, bias_row, *, block_rows=1024, out_dtype=None):
    """y = x_flat @ w_t + bias (1x1 conv over channels), tiled over pixels.

    Cout is zero-padded to a multiple of 128 so the output stores are lane-dense
    (unmasked vst); the padding is sliced off afterwards.
    """
    p, cin = x_flat.shape
    cout = w_t.shape[1]
    out_dtype = x_flat.dtype if out_dtype is None else out_dtype

    cout_pad = _round_up(cout, 128)
    if cout_pad != cout:
        w_t = jnp.pad(w_t, ((0, 0), (0, cout_pad - cout)))
        bias_row = jnp.pad(bias_row, ((0, 0), (0, cout_pad - cout)))

    block_rows = max(8, (min(block_rows, _round_up(p, 8)) // 8) * 8)
    p_pad = _round_up(p, block_rows)
    if p_pad != p:
        x_flat = jnp.pad(x_flat, ((0, p_pad - p), (0, 0)))

    out = pl.pallas_call(
        _pointwise_conv_kernel,
        out_shape=jax.ShapeDtypeStruct((p_pad, cout_pad), out_dtype),
        grid=(p_pad // block_rows,),
        in_specs=[
            pl.BlockSpec((block_rows, cin), lambda i: (i, 0)),
            pl.BlockSpec((cin, cout_pad), lambda i: (0, 0)),     # resident weights
            pl.BlockSpec((1, cout_pad), lambda i: (0, 0)),
        ],
        out_specs=pl.BlockSpec((block_rows, cout_pad), lambda i: (i, 0)),
        compiler_params=pltpu.CompilerParams(
            dimension_semantics=("parallel",),
            vmem_limit_bytes=32 * 1024 * 1024),
    )(x_flat, w_t, bias_row)
    return out[:p, :cout]


# ---------------------------------------------------------------------------
# Pallas kernel 2: patch attention  O = softmax(scale * Q K) V
# flash-attention style: K/V axis is the innermost ("arbitrary") reduction axis,
# queries tiled by block_q so VMEM is bounded independent of the image size.
# ---------------------------------------------------------------------------
def _patch_attention_kernel(q_ref, k_ref, v_ref, o_ref, m_sc, l_sc, acc_sc, *,
                            scale, l_kv, block_k):
    kv = pl.program_id(2)

    @pl.when(kv == 0)
    def _init():
        m_sc[...] = jnp.full(m_sc.shape, -jnp.inf, m_sc.dtype)
        l_sc[...] = jnp.zeros(l_sc.shape, l_sc.dtype)
        acc_sc[...] = jnp.zeros(acc_sc.shape, acc_sc.dtype)

    # (block_q, D) @ (D, block_k): K is pre-transposed, plain MXU matmul, bf16 in,
    # f32 accumulation.
    s = jnp.dot(q_ref[...], k_ref[...],
                preferred_element_type=jnp.float32) * scale

    if l_kv % block_k != 0:
        # Mask padded key columns (zero-padded in the wrapper) to -inf so they do
        # not contribute to the softmax normalization.
        col = kv * block_k + jax.lax.broadcasted_iota(jnp.int32, s.shape, 1)
        s = jnp.where(col < l_kv, s, -jnp.inf)

    m_prev = m_sc[...]
    m_new = jnp.maximum(m_prev, jnp.max(s, axis=-1, keepdims=True))
    alpha = jnp.exp(m_prev - m_new)
    probs = jnp.exp(s - m_new)
    l_sc[...] = alpha * l_sc[...] + jnp.sum(probs, axis=-1, keepdims=True)
    acc_sc[...] = alpha * acc_sc[...] + jnp.dot(
        probs.astype(v_ref.dtype), v_ref[...],
        preferred_element_type=jnp.float32)
    m_sc[...] = m_new

    @pl.when(kv == pl.num_programs(2) - 1)
    def _finalize():
        o_ref[...] = (acc_sc[...] *
                      pl.reciprocal(l_sc[...], approx=True)).astype(o_ref.dtype)


def patch_attention(q, k_t, v, *, scale, block_q=256, block_k=256,
                    out_dtype=None):
    """softmax(scale * q @ k_t) @ v per batch element.

    q:   (N, L1, D)   (bf16 recommended)
    k_t: (N, D, L2)   pre-transposed keys
    v:   (N, L2, D)
    """
    n, l_q, d = q.shape
    _, _, l_kv = k_t.shape
    out_dtype = q.dtype if out_dtype is None else out_dtype

    block_q = max(8, min(block_q, _round_up(l_q, 8)))
    block_q = (block_q // 8) * 8
    block_k = max(128, min(block_k, _round_up(l_kv, 128)))
    block_k = (block_k // 128) * 128

    lq_pad = _round_up(l_q, block_q)
    lkv_pad = _round_up(l_kv, block_k)
    if lq_pad != l_q:
        q = jnp.pad(q, ((0, 0), (0, lq_pad - l_q), (0, 0)))
    if lkv_pad != l_kv:
        k_t = jnp.pad(k_t, ((0, 0), (0, 0), (0, lkv_pad - l_kv)))
        v = jnp.pad(v, ((0, 0), (0, lkv_pad - l_kv), (0, 0)))

    q_steps = lq_pad // block_q
    kv_steps = lkv_pad // block_k

    cost = pl.CostEstimate(
        flops=int(4 * n * l_q * l_kv * d),
        transcendentals=int(n * l_q * l_kv),
        bytes_accessed=int(q.size * q.dtype.itemsize
                           + k_t.size * k_t.dtype.itemsize
                           + v.size * v.dtype.itemsize
                           + n * lq_pad * d * jnp.dtype(out_dtype).itemsize))

    out = pl.pallas_call(
        functools.partial(_patch_attention_kernel, scale=scale,
                          l_kv=l_kv, block_k=block_k),
        out_shape=jax.ShapeDtypeStruct((n, lq_pad, d), out_dtype),
        grid=(n, q_steps, kv_steps),
        in_specs=[
            pl.BlockSpec((None, block_q, d), lambda b, qi, kv: (b, qi, 0)),
            pl.BlockSpec((None, d, block_k), lambda b, qi, kv: (b, 0, kv)),
            pl.BlockSpec((None, block_k, d), lambda b, qi, kv: (b, kv, 0)),
        ],
        out_specs=pl.BlockSpec((None, block_q, d), lambda b, qi, kv: (b, qi, 0)),
        scratch_shapes=[
            pltpu.VMEM((block_q, 1), jnp.float32),   # running max
            pltpu.VMEM((block_q, 1), jnp.float32),   # running denom
            pltpu.VMEM((block_q, d), jnp.float32),   # output accumulator
        ],
        compiler_params=pltpu.CompilerParams(
            dimension_semantics=("parallel", "parallel", "arbitrary"),
            vmem_limit_bytes=64 * 1024 * 1024),
        cost_estimate=cost,
    )(q, k_t, v)
    return out[:, :l_q, :]


# ---------------------------------------------------------------------------
# Pallas kernel 3: fold-count normalization + W (1x1 conv) + residual add.
# ---------------------------------------------------------------------------
def _norm_conv_residual_kernel(y_ref, inv_ref, r_ref, w_ref, b_ref, o_ref):
    y = y_ref[...] * inv_ref[...]          # overlap-count norm (precomputed 1/count)
    acc = jnp.dot(y, w_ref[...], preferred_element_type=jnp.float32)
    o_ref[...] = (acc + b_ref[...] + r_ref[...]).astype(o_ref.dtype)


def norm_conv_residual(y_flat, inv_flat, res_flat, w_t, bias_row, *,
                       block_rows=1024):
    p, ci = y_flat.shape
    cout = w_t.shape[1]

    cout_pad = _round_up(cout, 128)        # lane-dense output stores
    if cout_pad != cout:
        w_t = jnp.pad(w_t, ((0, 0), (0, cout_pad - cout)))
        bias_row = jnp.pad(bias_row, ((0, 0), (0, cout_pad - cout)))
        res_flat = jnp.pad(res_flat, ((0, 0), (0, cout_pad - cout)))

    block_rows = max(8, (min(block_rows, _round_up(p, 8)) // 8) * 8)
    p_pad = _round_up(p, block_rows)
    if p_pad != p:
        pad = p_pad - p
        y_flat = jnp.pad(y_flat, ((0, pad), (0, 0)))
        inv_flat = jnp.pad(inv_flat, ((0, pad), (0, 0)))
        res_flat = jnp.pad(res_flat, ((0, pad), (0, 0)))

    out = pl.pallas_call(
        _norm_conv_residual_kernel,
        out_shape=jax.ShapeDtypeStruct((p_pad, cout_pad), y_flat.dtype),
        grid=(p_pad // block_rows,),
        in_specs=[
            pl.BlockSpec((block_rows, ci), lambda i: (i, 0)),
            pl.BlockSpec((block_rows, 1), lambda i: (i, 0)),
            pl.BlockSpec((block_rows, cout_pad), lambda i: (i, 0)),
            pl.BlockSpec((ci, cout_pad), lambda i: (0, 0)),      # resident weights
            pl.BlockSpec((1, cout_pad), lambda i: (0, 0)),
        ],
        out_specs=pl.BlockSpec((block_rows, cout_pad), lambda i: (i, 0)),
        compiler_params=pltpu.CompilerParams(
            dimension_semantics=("parallel",),
            vmem_limit_bytes=32 * 1024 * 1024),
    )(y_flat, inv_flat, res_flat, w_t, bias_row)
    return out[:p, :cout]


# ---------------------------------------------------------------------------
# Data-movement helpers (torch unfold / fold semantics), done in JAX.
# TODO(synk): unfold / overlap-add fold are pure gather / scatter-add data
# movement with no clean single-Pallas-kernel equivalent; kept in JAX.
# ---------------------------------------------------------------------------
def unfold_same(x, ksize, stride):
    """extract_image_patches_og: 'same' padding + nn.Unfold.

    Returns (N, C*k*k, nH*nW) with torch's (C, kh, kw) channel-major ordering
    and row-major (ih, iw) patch ordering, plus the patch-grid shape.
    """
    n, c, h, w = x.shape
    out_h = (h + stride - 1) // stride
    out_w = (w + stride - 1) // stride
    pad_h = max(0, (out_h - 1) * stride + ksize - h)
    pad_w = max(0, (out_w - 1) * stride + ksize - w)
    pt, pb = pad_h // 2, pad_h - pad_h // 2
    pleft, pright = pad_w // 2, pad_w - pad_w // 2
    xp = jnp.pad(x, ((0, 0), (0, 0), (pt, pb), (pleft, pright)))
    hp, wp = h + pad_h, w + pad_w
    nh = (hp - ksize) // stride + 1
    nw = (wp - ksize) // stride + 1
    rows = (jnp.arange(nh) * stride)[:, None] + jnp.arange(ksize)[None, :]
    cols = (jnp.arange(nw) * stride)[:, None] + jnp.arange(ksize)[None, :]
    p = xp[:, :, rows, :]            # (N, C, nh, k, Wp)
    p = p[:, :, :, :, cols]          # (N, C, nh, k, nw, k)
    p = jnp.transpose(p, (0, 1, 3, 5, 2, 4))   # (N, C, kh, kw, nh, nw)
    return p.reshape(n, c * ksize * ksize, nh * nw), (nh, nw)


def fold_patches(patches, h, w, ksize, stride, pad):
    """torch F.fold: overlap-add patches (N, L, C, k, k) into (N, C, H, W)."""
    n, l, c = patches.shape[:3]
    nh = (h + 2 * pad - ksize) // stride + 1
    nw = (w + 2 * pad - ksize) // stride + 1
    assert nh * nw == l
    rows = (jnp.arange(nh) * stride - pad)[:, None] + jnp.arange(ksize)[None, :]
    cols = (jnp.arange(nw) * stride - pad)[:, None] + jnp.arange(ksize)[None, :]
    r = jnp.broadcast_to(rows[:, None, :, None],
                         (nh, nw, ksize, ksize)).reshape(l, ksize, ksize)
    cc = jnp.broadcast_to(cols[None, :, None, :],
                          (nh, nw, ksize, ksize)).reshape(l, ksize, ksize)
    valid = (r >= 0) & (r < h) & (cc >= 0) & (cc < w)
    r_cl = jnp.clip(r, 0, h - 1)
    c_cl = jnp.clip(cc, 0, w - 1)
    vals = jnp.transpose(patches, (0, 2, 1, 3, 4)) \
        * valid[None, None].astype(patches.dtype)
    out = jnp.zeros((n, c, h, w), patches.dtype)
    return out.at[:, :, r_cl, c_cl].add(vals)


# ---------------------------------------------------------------------------
# Full forward (add_SE=False path of ContextualAttention_Enhance.forward).
# ---------------------------------------------------------------------------
def contextual_attention_forward(b, params, *, ksize=7, stride_1=4, stride_2=1,
                                 softmax_scale=10.0, block_q=256, block_k=256,
                                 mxu_dtype=jnp.bfloat16):
    n, cin, h, w = b.shape
    wg, bg, wth, bth, wph, bph, w_out, b_out = params
    ci = wg.shape[0]
    p = n * h * w

    # g / theta / phi: one fused 1x1-conv Pallas kernel (b read once); outputs in
    # mxu_dtype (bf16) so the unfolded Q/K/V materialize at half HBM footprint.
    x_flat = jnp.transpose(b, (0, 2, 3, 1)).reshape(p, cin)
    w_cat = jnp.concatenate([wg.T, wth.T, wph.T], axis=1)          # (Cin, 3*Ci)
    bias_cat = jnp.concatenate([bg, bth, bph]).reshape(1, 3 * ci)
    gtp = pointwise_conv(x_flat, w_cat, bias_cat, out_dtype=mxu_dtype)

    def to_nchw(a):
        return jnp.transpose(a.reshape(n, h, w, ci), (0, 3, 1, 2))

    b1 = to_nchw(gtp[:, :ci])                # g(b)      -> queries
    b2 = to_nchw(gtp[:, ci:2 * ci])          # theta(b)  -> values
    b3 = to_nchw(gtp[:, 2 * ci:3 * ci])      # phi(b)    -> keys

    # Patch extraction (torch unfold with 'same' padding).
    # TODO(synk): stride_2=1 unfold expands K/V ~k*k times in HBM; the structural
    # fix (gathering the kxk windows inside the attention kernel from the NCHW
    # phi/theta maps via pl.ANY + make_async_copy) is not implemented here.
    q, (nh1, nw1) = unfold_same(b1, ksize, stride_1)   # (N, D, L1)
    kk, _ = unfold_same(b3, ksize, stride_2)           # (N, D, L2) kept pre-transposed
    vv, _ = unfold_same(b2, ksize, stride_2)           # (N, D, L2)
    q = jnp.transpose(q, (0, 2, 1))                    # (N, L1, D)
    vv = jnp.transpose(vv, (0, 2, 1))                  # (N, L2, D)

    # Attention over patches (Pallas flash-style kernel, f32 output for the fold).
    o = patch_attention(q, kk, vv, scale=softmax_scale, block_q=block_q,
                        block_k=block_k, out_dtype=jnp.float32)    # (N, L1, D)

    # Fold back (overlap-add) + overlap-count map.
    pad_fold = (ksize - 1) // 2
    l1 = nh1 * nw1
    z = fold_patches(o.reshape(n, l1, ci, ksize, ksize),
                     h, w, ksize, stride_1, pad_fold)              # (N, Ci, H, W)
    count = fold_patches(jnp.ones((1, l1, 1, ksize, ksize), jnp.float32),
                         h, w, ksize, stride_1, pad_fold)          # (1, 1, H, W)
    inv_count = (1.0 / count[0, 0]).reshape(h * w, 1)
    # TODO(synk): inv_count is batch-independent; a modulo index_map could avoid
    # replicating it across batch when block_rows divides h*w.
    inv_flat = jnp.tile(inv_count, (n, 1))

    # z * (1/count), W-conv and residual, fused in one Pallas kernel.
    y_flat = jnp.transpose(z, (0, 2, 3, 1)).reshape(p, ci)
    out_flat = norm_conv_residual(y_flat, inv_flat, x_flat, w_out.T,
                                  b_out.reshape(1, cin))
    return jnp.transpose(out_flat.reshape(n, h, w, cin), (0, 3, 1, 2))


# ---------------------------------------------------------------------------
# Pure-JAX reference (matched MXU precision) for verification.
# ---------------------------------------------------------------------------
def reference_forward(b, params, *, ksize=7, stride_1=4, stride_2=1,
                      softmax_scale=10.0, mxu_dtype=jnp.bfloat16):
    n, cin, h, w = b.shape
    wg, bg, wth, bth, wph, bph, w_out, b_out = params
    ci = wg.shape[0]

    def conv1x1(x, wt, bias):
        y = jnp.einsum('nchw,oc->nohw', x, wt,
                       precision=jax.lax.Precision.HIGHEST)
        return y + bias[None, :, None, None]

    b1 = conv1x1(b, wg, bg).astype(mxu_dtype)
    b2 = conv1x1(b, wth, bth).astype(mxu_dtype)
    b3 = conv1x1(b, wph, bph).astype(mxu_dtype)

    q, (nh1, nw1) = unfold_same(b1, ksize, stride_1)
    kk, _ = unfold_same(b3, ksize, stride_2)
    vv, _ = unfold_same(b2, ksize, stride_2)
    q = jnp.transpose(q, (0, 2, 1))
    kk = jnp.transpose(kk, (0, 2, 1))
    vv = jnp.transpose(vv, (0, 2, 1))

    s = jnp.einsum('nqd,nkd->nqk', q, kk,
                   preferred_element_type=jnp.float32) * softmax_scale
    attn = jax.nn.softmax(s, axis=-1)
    o = jnp.einsum('nqk,nkd->nqd', attn.astype(mxu_dtype), vv,
                   preferred_element_type=jnp.float32)

    pad_fold = (ksize - 1) // 2
    l1 = nh1 * nw1
    z = fold_patches(o.reshape(n, l1, ci, ksize, ksize),
                     h, w, ksize, stride_1, pad_fold)
    count = fold_patches(jnp.ones((1, l1, 1, ksize, ksize), jnp.float32),
                         h, w, ksize, stride_1, pad_fold)
    z = z / count
    return conv1x1(z, w_out, b_out) + b


def _init_params(key, in_channels, inter_channels):
    ks = jax.random.split(key, 8)

    def conv_init(kw, kb, cout, cin):
        bound = float(cin) ** -0.5
        wgt = jax.random.uniform(kw, (cout, cin), jnp.float32, -bound, bound)
        bias = jax.random.uniform(kb, (cout,), jnp.float32, -bound, bound)
        return wgt, bias

    wg, bg = conv_init(ks[0], ks[1], inter_channels, in_channels)
    wth, bth = conv_init(ks[2], ks[3], inter_channels, in_channels)
    wph, bph = conv_init(ks[4], ks[5], inter_channels, in_channels)
    w_out, b_out = conv_init(ks[6], ks[7], in_channels, inter_channels)
    return (wg, bg, wth, bth, wph, bph, w_out, b_out)


if __name__ == "__main__":
    N, CIN, H, W = 2, 16, 16, 16          # batch, in_channels, spatial
    CI = 4                                # inter_channels
    KSIZE, STRIDE_1, STRIDE_2 = 7, 4, 1
    SOFTMAX_SCALE = 10.0

    key = jax.random.PRNGKey(0)
    kx, kp = jax.random.split(key)
    b = jax.random.normal(kx, (N, CIN, H, W), jnp.float32)
    params = _init_params(kp, CIN, CI)

    fwd = jax.jit(functools.partial(
        contextual_attention_forward, ksize=KSIZE, stride_1=STRIDE_1,
        stride_2=STRIDE_2, softmax_scale=SOFTMAX_SCALE,
        block_q=256, block_k=256, mxu_dtype=jnp.bfloat16))
    out = jax.block_until_ready(fwd(b, params))

    ref = reference_forward(b, params, ksize=KSIZE, stride_1=STRIDE_1,
                            stride_2=STRIDE_2, softmax_scale=SOFTMAX_SCALE,
                            mxu_dtype=jnp.bfloat16)
    assert out.shape == (N, CIN, H, W), out.shape
    max_err = float(jnp.max(jnp.abs(out - ref)))
    # bf16 MXU inputs + approx reciprocal in the finalize step: compare against a
    # matched-precision reference with a correspondingly relaxed tolerance.
    assert max_err < 3e-2, max_err
    print("KERNEL_OK")
</pallas_src>

<mosaic_0001>
module attributes {stable_mosaic.version = 11 : i64} {
  func.func @_pointwise_conv_kernel(%arg0: i32, %arg1: memref<512x16xf32, #tpu.memory_space<vmem>>, %arg2: memref<16x128xf32, #tpu.memory_space<vmem>>, %arg3: memref<1x128xf32, #tpu.memory_space<vmem>>, %arg4: memref<512x128xbf16, #tpu.memory_space<vmem>>) attributes {dimension_semantics = [#tpu.dimension_semantics<parallel>], iteration_bounds = array<i64: 1>, scalar_prefetch = 0 : i64, scratch_operands = 0 : i64, tpu.core_type = #tpu.core_type<tc>, window_params = [{transform_indices = @transform_0, window_bounds = array<i64: 512, 16>}, {pipeline_mode = #tpu.pipeline_mode<synchronous>, transform_indices = @transform_1, window_bounds = array<i64: 16, 128>}, {pipeline_mode = #tpu.pipeline_mode<synchronous>, transform_indices = @transform_2, window_bounds = array<i64: 1, 128>}, {transform_indices = @transform_3, window_bounds = array<i64: 512, 128>}]} {
    %c0 = arith.constant 0 : index
    %c0_0 = arith.constant 0 : index
    %0 = vector.load %arg1[%c0, %c0_0] : memref<512x16xf32, #tpu.memory_space<vmem>>, vector<512x16xf32>
    %c0_1 = arith.constant 0 : index
    %c0_2 = arith.constant 0 : index
    %1 = vector.load %arg2[%c0_1, %c0_2] : memref<16x128xf32, #tpu.memory_space<vmem>>, vector<16x128xf32>
    %cst = arith.constant dense<0.000000e+00> : vector<512x128xf32>
    %2 = tpu.matmul %0, %1, %cst {dimension_numbers = #tpu.dot_dimension_numbers<[1], [0], [0], [1], [0, 0, 1, 1], [], []>} : vector<512x16xf32>, vector<16x128xf32>, vector<512x128xf32> -> vector<512x128xf32>
    %c0_3 = arith.constant 0 : index
    %c0_4 = arith.constant 0 : index
    %3 = vector.load %arg3[%c0_3, %c0_4] : memref<1x128xf32, #tpu.memory_space<vmem>>, vector<1x128xf32>
    %4 = vector.broadcast %3 : vector<1x128xf32> to vector<512x128xf32>
    %5 = arith.addf %2, %4 : vector<512x128xf32>
    %6 = arith.truncf %5 : vector<512x128xf32> to vector<512x128xbf16>
    %c0_5 = arith.constant 0 : index
    %c0_6 = arith.constant 0 : index
    %7 = vector.load %arg4[%c0_5, %c0_6] : memref<512x128xbf16, #tpu.memory_space<vmem>>, vector<512x128xbf16>
    tpu.vector_store %arg4[%c0_5, %c0_6], %6 {strides = array<i32>} : memref<512x128xbf16, #tpu.memory_space<vmem>>, vector<512x128xbf16>,
    return
  }
  func.func @transform_0(%arg0: i32) -> (i32, i32) {
    %c0_i32 = arith.constant 0 : i32
    %c0_i32_0 = arith.constant 0 : i32
    return %arg0, %c0_i32 : i32, i32
  }
  func.func @transform_1(%arg0: i32) -> (i32, i32) {
    %c0_i32 = arith.constant 0 : i32
    %c0_i32_0 = arith.constant 0 : i32
    %c0_i32_1 = arith.constant 0 : i32
    return %c0_i32, %c0_i32_0 : i32, i32
  }
  func.func @transform_2(%arg0: i32) -> (i32, i32) {
    %c0_i32 = arith.constant 0 : i32
    %c0_i32_0 = arith.constant 0 : i32
    %c0_i32_1 = arith.constant 0 : i32
    return %c0_i32, %c0_i32_0 : i32, i32
  }
  func.func @transform_3(%arg0: i32) -> (i32, i32) {
    %c0_i32 = arith.constant 0 : i32
    %c0_i32_0 = arith.constant 0 : i32
    return %arg0, %c0_i32 : i32, i32
  }
}

module attributes {stable_mosaic.version = 11 : i64} {
  func.func @_patch_attention_kernel(%arg0: i32, %arg1: i32, %arg2: i32, %arg3: memref<1x16x196xbf16, #tpu.memory_space<vmem>>, %arg4: memref<1x196x256xbf16, #tpu.memory_space<vmem>>, %arg5: memref<1x256x196xbf16, #tpu.memory_space<vmem>>, %arg6: memref<1x16x196xf32, #tpu.memory_space<vmem>>, %arg7: memref<16x1xf32, #tpu.memory_space<vmem>>, %arg8: memref<16x1xf32, #tpu.memory_space<vmem>>, %arg9: memref<16x196xf32, #tpu.memory_space<vmem>>) attributes {dimension_semantics = [#tpu.dimension_semantics<parallel>, #tpu.dimension_semantics<parallel>, #tpu.dimension_semantics<arbitrary>], iteration_bounds = array<i64: 2, 1, 1>, scalar_prefetch = 0 : i64, scratch_operands = 3 : i64, tpu.core_type = #tpu.core_type<tc>, window_params = [{transform_indices = @transform_0, window_bounds = array<i64: 1, 16, 196>}, {transform_indices = @transform_1, window_bounds = array<i64: 1, 196, 256>}, {transform_indices = @transform_2, window_bounds = array<i64: 1, 256, 196>}, {transform_indices = @transform_3, window_bounds = array<i64: 1, 16, 196>}]} {
    %c0_i32 = arith.constant 0 : i32
    %0 = arith.cmpi eq, %arg2, %c0_i32 : i32
    %1 = arith.extui %0 : i1 to i32
    %c0_i32_0 = arith.constant 0 : i32
    %2 = arith.cmpi ne, %1, %c0_i32_0 : i32
    scf.if %2 {
      %cst_27 = arith.constant 0xFF800000 : f32
      %38 = vector.broadcast %cst_27 : f32 to vector<16x1xf32>
      %c0_28 = arith.constant 0 : index
      %c0_29 = arith.constant 0 : index
      %39 = vector.load %arg7[%c0_28, %c0_29] : memref<16x1xf32, #tpu.memory_space<vmem>>, vector<16x1xf32>
      tpu.vector_store %arg7[%c0_28, %c0_29], %38 {strides = array<i32>} : memref<16x1xf32, #tpu.memory_space<vmem>>, vector<16x1xf32>,
      %cst_30 = arith.constant 0.000000e+00 : f32
      %40 = vector.broadcast %cst_30 : f32 to vector<16x1xf32>
      %c0_31 = arith.constant 0 : index
      %c0_32 = arith.constant 0 : index
      %41 = vector.load %arg8[%c0_31, %c0_32] : memref<16x1xf32, #tpu.memory_space<vmem>>, vector<16x1xf32>
      tpu.vector_store %arg8[%c0_31, %c0_32], %40 {strides = array<i32>} : memref<16x1xf32, #tpu.memory_space<vmem>>, vector<16x1xf32>,
      %cst_33 = arith.constant 0.000000e+00 : f32
      %42 = vector.broadcast %cst_33 : f32 to vector<16x196xf32>
      %c0_34 = arith.constant 0 : index
      %c0_35 = arith.constant 0 : index
      %43 = vector.load %arg9[%c0_34, %c0_35] : memref<16x196xf32, #tpu.memory_space<vmem>>, vector<16x196xf32>
      tpu.vector_store %arg9[%c0_34, %c0_35], %42 {strides = array<i32>} : memref<16x196xf32, #tpu.memory_space<vmem>>, vector<16x196xf32>,
    } else {
    }
    %c0 = arith.constant 0 : index
    %c0_1 = arith.constant 0 : index
    %c0_2 = arith.constant 0 : index
    %3 = vector.load %arg3[%c0, %c0_1, %c0_2] : memref<1x16x196xbf16, #tpu.memory_space<vmem>>, vector<1x16x196xbf16>
    %4 = vector.shape_cast %3 : vector<1x16x196xbf16> to vector<16x196xbf16>
    %c0_3 = arith.constant 0 : index
    %c0_4 = arith.constant 0 : index
    %c0_5 = arith.constant 0 : index
    %5 = vector.load %arg4[%c0_3, %c0_4, %c0_5] : memref<1x196x256xbf16, #tpu.memory_space<vmem>>, vector<1x196x256xbf16>
    %6 = vector.shape_cast %5 : vector<1x196x256xbf16> to vector<196x256xbf16>
    %cst = arith.constant dense<0.000000e+00> : vector<16x256xf32>
    %7 = tpu.matmul %4, %6, %cst {dimension_numbers = #tpu.dot_dimension_numbers<[1], [0], [0], [1], [0, 0, 1, 1], [], []>} : vector<16x196xbf16>, vector<196x256xbf16>, vector<16x256xf32> -> vector<16x256xf32>
    %cst_6 = arith.constant 1.000000e+01 : f32
    %8 = vector.broadcast %cst_6 : f32 to vector<16x256xf32>
    %9 = arith.mulf %7, %8 : vector<16x256xf32>
    %c0_7 = arith.constant 0 : index
    %c0_8 = arith.constant 0 : index
    %10 = vector.load %arg7[%c0_7, %c0_8] : memref<16x1xf32, #tpu.memory_space<vmem>>, vector<16x1xf32>
    %cst_9 = arith.constant dense<0xFF800000> : vector<16xf32>
    %11 = vector.multi_reduction <maximumf>, %9, %cst_9 [1] : vector<16x256xf32> to vector<16xf32>
    %12 = vector.shape_cast %11 : vector<16xf32> to vector<16x1xf32>
    %13 = arith.maximumf %10, %12 : vector<16x1xf32>
    %14 = arith.subf %10, %13 : vector<16x1xf32>
    %15 = math.exp %14 : vector<16x1xf32>
    %16 = vector.broadcast %13 : vector<16x1xf32> to vector<16x256xf32>
    %17 = arith.subf %9, %16 : vector<16x256xf32>
    %18 = math.exp %17 : vector<16x256xf32>
    %c0_10 = arith.constant 0 : index
    %c0_11 = arith.constant 0 : index
    %19 = vector.load %arg8[%c0_10, %c0_11] : memref<16x1xf32, #tpu.memory_space<vmem>>, vector<16x1xf32>
    %20 = arith.mulf %15, %19 : vector<16x1xf32>
    %cst_12 = arith.constant dense<0.000000e+00> : vector<16xf32>
    %21 = vector.multi_reduction <add>, %18, %cst_12 [1] : vector<16x256xf32> to vector<16xf32>
    %22 = vector.shape_cast %21 : vector<16xf32> to vector<16x1xf32>
    %23 = arith.addf %20, %22 : vector<16x1xf32>
    %c0_13 = arith.constant 0 : index
    %c0_14 = arith.constant 0 : index
    %24 = vector.load %arg8[%c0_13, %c0_14] : memref<16x1xf32, #tpu.memory_space<vmem>>, vector<16x1xf32>
    tpu.vector_store %arg8[%c0_13, %c0_14], %23 {strides = array<i32>} : memref<16x1xf32, #tpu.memory_space<vmem>>, vector<16x1xf32>,
    %c0_15 = arith.constant 0 : index
    %c0_16 = arith.constant 0 : index
    %25 = vector.load %arg9[%c0_15, %c0_16] : memref<16x196xf32, #tpu.memory_space<vmem>>, vector<16x196xf32>
    %26 = vector.broadcast %15 : vector<16x1xf32> to vector<16x196xf32>
    %27 = arith.mulf %26, %25 : vector<16x196xf32>
    %28 = arith.truncf %18 : vector<16x256xf32> to vector<16x256xbf16>
    %c0_17 = arith.constant 0 : index
    %c0_18 = arith.constant 0 : index
    %c0_19 = arith.constant 0 : index
    %29 = vector.load %arg5[%c0_17, %c0_18, %c0_19] : memref<1x256x196xbf16, #tpu.memory_space<vmem>>, vector<1x256x196xbf16>
    %30 = vector.shape_cast %29 : vector<1x256x196xbf16> to vector<256x196xbf16>
    %cst_20 = arith.constant dense<0.000000e+00> : vector<16x196xf32>
    %31 = tpu.matmul %28, %30, %cst_20 {dimension_numbers = #tpu.dot_dimension_numbers<[1], [0], [0], [1], [0, 0, 1, 1], [], []>} : vector<16x256xbf16>, vector<256x196xbf16>, vector<16x196xf32> -> vector<16x196xf32>
    %32 = arith.addf %27, %31 : vector<16x196xf32>
    %c0_21 = arith.constant 0 : index
    %c0_22 = arith.constant 0 : index
    %33 = vector.load %arg9[%c0_21, %c0_22] : memref<16x196xf32, #tpu.memory_space<vmem>>, vector<16x196xf32>
    tpu.vector_store %arg9[%c0_21, %c0_22], %32 {strides = array<i32>} : memref<16x196xf32, #tpu.memory_space<vmem>>, vector<16x196xf32>,
    %c0_23 = arith.constant 0 : index
    %c0_24 = arith.constant 0 : index
    %34 = vector.load %arg7[%c0_23, %c0_24] : memref<16x1xf32, #tpu.memory_space<vmem>>, vector<16x1xf32>
    tpu.vector_store %arg7[%c0_23, %c0_24], %13 {strides = array<i32>} : memref<16x1xf32, #tpu.memory_space<vmem>>, vector<16x1xf32>,
    %c0_i32_25 = arith.constant 0 : i32
    %35 = arith.cmpi eq, %arg2, %c0_i32_25 : i32
    %36 = arith.extui %35 : i1 to i32
    %c0_i32_26 = arith.constant 0 : i32
    %37 = arith.cmpi ne, %36, %c0_i32_26 : i32
    scf.if %37 {
      %c0_27 = arith.constant 0 : index
      %c0_28 = arith.constant 0 : index
      %38 = vector.load %arg9[%c0_27, %c0_28] : memref<16x196xf32, #tpu.memory_space<vmem>>, vector<16x196xf32>
      %c0_29 = arith.constant 0 : index
      %c0_30 = arith.constant 0 : index
      %39 = vector.load %arg8[%c0_29, %c0_30] : memref<16x1xf32, #tpu.memory_space<vmem>>, vector<16x1xf32>
      %40 = tpu.reciprocal %39 {approx = true} : vector<16x1xf32> -> vector<16x1xf32>
      %41 = vector.broadcast %40 : vector<16x1xf32> to vector<16x196xf32>
      %42 = arith.mulf %38, %41 : vector<16x196xf32>
      %c0_31 = arith.constant 0 : index
      %c0_32 = arith.constant 0 : index
      %c0_33 = arith.constant 0 : index
      %43 = vector.load %arg6[%c0_31, %c0_32, %c0_33] : memref<1x16x196xf32, #tpu.memory_space<vmem>>, vector<1x16x196xf32>
      %44 = vector.shape_cast %43 : vector<1x16x196xf32> to vector<16x196xf32>
      %45 = vector.shape_cast %42 : vector<16x196xf32> to vector<1x16x196xf32>
      tpu.vector_store %arg6[%c0_31, %c0_32, %c0_33], %45 {strides = array<i32>} : memref<1x16x196xf32, #tpu.memory_space<vmem>>, vector<1x16x196xf32>,
    } else {
    }
    return
  }
  func.func @transform_0(%arg0: i32, %arg1: i32, %arg2: i32) -> (i32, i32, i32) {
    %c0_i32 = arith.constant 0 : i32
    %c0_i32_0 = arith.constant 0 : i32
    return %arg0, %arg1, %c0_i32 : i32, i32, i32
  }
  func.func @transform_1(%arg0: i32, %arg1: i32, %arg2: i32) -> (i32, i32, i32) {
    %c0_i32 = arith.constant 0 : i32
    %c0_i32_0 = arith.constant 0 : i32
    return %arg0, %c0_i32, %arg2 : i32, i32, i32
  }
  func.func @transform_2(%arg0: i32, %arg1: i32, %arg2: i32) -> (i32, i32, i32) {
    %c0_i32 = arith.constant 0 : i32
    %c0_i32_0 = arith.constant 0 : i32
    return %arg0, %arg2, %c0_i32 : i32, i32, i32
  }
  func.func @transform_3(%arg0: i32, %arg1: i32, %arg2: i32) -> (i32, i32, i32) {
    %c0_i32 = arith.constant 0 : i32
    %c0_i32_0 = arith.constant 0 : i32
    return %arg0, %arg1, %c0_i32 : i32, i32, i32
  }
}

module attributes {stable_mosaic.version = 11 : i64} {
  func.func @_norm_conv_residual_kernel(%arg0: i32, %arg1: memref<512x4xf32, #tpu.memory_space<vmem>>, %arg2: memref<512x1xf32, #tpu.memory_space<vmem>>, %arg3: memref<512x128xf32, #tpu.memory_space<vmem>>, %arg4: memref<4x128xf32, #tpu.memory_space<vmem>>, %arg5: memref<1x128xf32, #tpu.memory_space<vmem>>, %arg6: memref<512x128xf32, #tpu.memory_space<vmem>>) attributes {dimension_semantics = [#tpu.dimension_semantics<parallel>], iteration_bounds = array<i64: 1>, scalar_prefetch = 0 : i64, scratch_operands = 0 : i64, tpu.core_type = #tpu.core_type<tc>, window_params = [{transform_indices = @transform_0, window_bounds = array<i64: 512, 4>}, {transform_indices = @transform_1, window_bounds = array<i64: 512, 1>}, {transform_indices = @transform_2, window_bounds = array<i64: 512, 128>}, {pipeline_mode = #tpu.pipeline_mode<synchronous>, transform_indices = @transform_3, window_bounds = array<i64: 4, 128>}, {pipeline_mode = #tpu.pipeline_mode<synchronous>, transform_indices = @transform_4, window_bounds = array<i64: 1, 128>}, {transform_indices = @transform_5, window_bounds = array<i64: 512, 128>}]} {
    %c0 = arith.constant 0 : index
    %c0_0 = arith.constant 0 : index
    %0 = vector.load %arg1[%c0, %c0_0] : memref<512x4xf32, #tpu.memory_space<vmem>>, vector<512x4xf32>
    %c0_1 = arith.constant 0 : index
    %c0_2 = arith.constant 0 : index
    %1 = vector.load %arg2[%c0_1, %c0_2] : memref<512x1xf32, #tpu.memory_space<vmem>>, vector<512x1xf32>
    %2 = vector.broadcast %1 : vector<512x1xf32> to vector<512x4xf32>
    %3 = arith.mulf %0, %2 : vector<512x4xf32>
    %c0_3 = arith.constant 0 : index
    %c0_4 = arith.constant 0 : index
    %4 = vector.load %arg4[%c0_3, %c0_4] : memref<4x128xf32, #tpu.memory_space<vmem>>, vector<4x128xf32>
    %cst = arith.constant dense<0.000000e+00> : vector<512x128xf32>
    %5 = tpu.matmul %3, %4, %cst {dimension_numbers = #tpu.dot_dimension_numbers<[1], [0], [0], [1], [0, 0, 1, 1], [], []>} : vector<512x4xf32>, vector<4x128xf32>, vector<512x128xf32> -> vector<512x128xf32>
    %c0_5 = arith.constant 0 : index
    %c0_6 = arith.constant 0 : index
    %6 = vector.load %arg5[%c0_5, %c0_6] : memref<1x128xf32, #tpu.memory_space<vmem>>, vector<1x128xf32>
    %7 = vector.broadcast %6 : vector<1x128xf32> to vector<512x128xf32>
    %8 = arith.addf %5, %7 : vector<512x128xf32>
    %c0_7 = arith.constant 0 : index
    %c0_8 = arith.constant 0 : index
    %9 = vector.load %arg3[%c0_7, %c0_8] : memref<512x128xf32, #tpu.memory_space<vmem>>, vector<512x128xf32>
    %10 = arith.addf %8, %9 : vector<512x128xf32>
    %c0_9 = arith.constant 0 : index
    %c0_10 = arith.constant 0 : index
    %11 = vector.load %arg6[%c0_9, %c0_10] : memref<512x128xf32, #tpu.memory_space<vmem>>, vector<512x128xf32>
    tpu.vector_store %arg6[%c0_9, %c0_10], %10 {strides = array<i32>} : memref<512x128xf32, #tpu.memory_space<vmem>>, vector<512x128xf32>,
    return
  }
  func.func @transform_0(%arg0: i32) -> (i32, i32) {
    %c0_i32 = arith.constant 0 : i32
    %c0_i32_0 = arith.constant 0 : i32
    return %arg0, %c0_i32 : i32, i32
  }
  func.func @transform_1(%arg0: i32) -> (i32, i32) {
    %c0_i32 = arith.constant 0 : i32
    %c0_i32_0 = arith.constant 0 : i32
    return %arg0, %c0_i32 : i32, i32
  }
  func.func @transform_2(%arg0: i32) -> (i32, i32) {
    %c0_i32 = arith.constant 0 : i32
    %c0_i32_0 = arith.constant 0 : i32
    return %arg0, %c0_i32 : i32, i32
  }
  func.func @transform_3(%arg0: i32) -> (i32, i32) {
    %c0_i32 = arith.constant 0 : i32
    %c0_i32_0 = arith.constant 0 : i32
    %c0_i32_1 = arith.constant 0 : i32
    return %c0_i32, %c0_i32_0 : i32, i32
  }
  func.func @transform_4(%arg0: i32) -> (i32, i32) {
    %c0_i32 = arith.constant 0 : i32
    %c0_i32_0 = arith.constant 0 : i32
    %c0_i32_1 = arith.constant 0 : i32
    return %c0_i32, %c0_i32_0 : i32, i32
  }
  func.func @transform_5(%arg0: i32) -> (i32, i32) {
    %c0_i32 = arith.constant 0 : i32
    %c0_i32_0 = arith.constant 0 : i32
    return %arg0, %c0_i32 : i32, i32
  }
}

</mosaic_0001>

<bundles_post_ra>
// kernel: contextual_attention_forward.3
= control target key start
LH: loop header
LB: loop body
LE: loop exit
PB: predicated region body
PF: predicated region fallthrough
CT: control target
= control target key end

     0   :  { %vm84_vm0 = vcmask 130048   ;;  %s1327_s1 = inlined_call_operand.vmem [shape: f32[16,128], index: 1, kind: input, shape index: {}]   ;;  %s1328_s0 = inlined_call_operand.vmem [shape: f32[512,16], index: 0, kind: input, shape index: {}]   ;;  %s1329_s2 = inlined_call_operand.vmem [shape: f32[1,128], index: 2, kind: input, shape index: {}]   ;;  %s1330_s3 = inlined_call_operand.vmem [shape: bf16[512,128], index: 3, kind: output, shape index: {}]  }
   0x1   :  { %v79_v0 = vld [vmem:[%s1327_s1 + $0x8] sm:$0xff]  ;;  %v78_v1 = vld [vmem:[%s1327_s1] sm:$0xff]  ;;  %v16_v10 = vld [vmem:[%s1328_s0 + $0x10] sm:$0xff] }
   0x2   :  { %291 = vmatpush.msra.mxu0 %v79_v0  ;;  %873 = vmatpush.msra.mxu1 %v79_v0  ;;  %v14_v2 = vld [vmem:[%s1328_s0] sm:$0xff]  ;;  %v15_v6 = vld [vmem:[%s1328_s0 + $0x8] sm:$0xff]  ;;  %v32_v11 = vld [vmem:[%s1328_s0 + $0x90] sm:$0xff] }
   0x3   :  { %874 = vmatpush.msra.mxu2 %v79_v0  ;;  %875 = vmatpush.msra.mxu3 %v79_v0  ;;  %v30_v3 = vld [vmem:[%s1328_s0 + $0x80] sm:$0xff]  ;;  %v31_v7 = vld [vmem:[%s1328_s0 + $0x88] sm:$0xff]  ;;  %v48_v12 = vld [vmem:[%s1328_s0 + $0x110] sm:$0xff] }
   0x4   :  { %292 = vmatpush.msra.mxu0 %v78_v1  ;;  %876 = vmatpush.msra.mxu1 %v78_v1  ;;  %v46_v4 = vld [vmem:[%s1328_s0 + $0x100] sm:$0xff]  ;;  %v47_v8 = vld [vmem:[%s1328_s0 + $0x108] sm:$0xff]  ;;  %v64_v13 = vld [vmem:[%s1328_s0 + $0x190] sm:$0xff] }
   0x5   :  { %v62_v5 = vld [vmem:[%s1328_s0 + $0x180] sm:$0xff]  ;;  %877 = vmatpush.msra.mxu2 %v78_v1  ;;  %878 = vmatpush.msra.mxu3 %v78_v1  ;;  %v63_v9 = vld [vmem:[%s1328_s0 + $0x188] sm:$0xff]  ;;  %v17_v14 = vld [vmem:[%s1328_s0 + $0x18] sm:$0xff] }
   0x6   :  { %618 = vmatmul.msk.f32.vlgmr.msra.gmra.mxu0 %vm84_vm0, %v14_v2  ;;  %634 = vmatmul.msk.f32.vlgmr.msra.gmra.mxu1 %vm84_vm0, %v30_v3  ;;  %v33_v15 = vld [vmem:[%s1328_s0 + $0x98] sm:$0xff]  ;;  %v18_v18 = vld [vmem:[%s1328_s0 + $0x20] sm:$0xff]  ;;  %v19_v22 = vld [vmem:[%s1328_s0 + $0x28] sm:$0xff] }
   0x7   :  { %650 = vmatmul.msk.f32.vlgmr.msra.gmra.mxu2 %vm84_vm0, %v46_v4  ;;  %666 = vmatmul.msk.f32.vlgmr.msra.gmra.mxu3 %vm84_vm0, %v62_v5  ;;  %v49_v16 = vld [vmem:[%s1328_s0 + $0x118] sm:$0xff]  ;;  %v34_v19 = vld [vmem:[%s1328_s0 + $0xa0] sm:$0xff]  ;;  %v35_v23 = vld [vmem:[%s1328_s0 + $0xa8] sm:$0xff] }
   0x8   :  { %v65_v17 = vld [vmem:[%s1328_s0 + $0x198] sm:$0xff]  ;;  %v50_v20 = vld [vmem:[%s1328_s0 + $0x120] sm:$0xff]  ;;  %v51_v24 = vld [vmem:[%s1328_s0 + $0x128] sm:$0xff] }
   0x9   :  { %v66_v21 = vld [vmem:[%s1328_s0 + $0x1a0] sm:$0xff]  ;;  %v67_v25 = vld [vmem:[%s1328_s0 + $0x1a8] sm:$0xff]  ;;  %v20_v26 = vld [vmem:[%s1328_s0 + $0x30] sm:$0xff] }
   0xa   :  { %v36_v27 = vld [vmem:[%s1328_s0 + $0xb0] sm:$0xff]  ;;  %v21_v30 = vld [vmem:[%s1328_s0 + $0x38] sm:$0xff]  ;;  %v22_v34 = vld [vmem:[%s1328_s0 + $0x40] sm:$0xff] }
   0xb   :  { %v52_v28 = vld [vmem:[%s1328_s0 + $0x130] sm:$0xff]  ;;  %v37_v31 = vld [vmem:[%s1328_s0 + $0xb8] sm:$0xff]  ;;  %v38_v35 = vld [vmem:[%s1328_s0 + $0xc0] sm:$0xff] }
   0xc   :  { %v68_v29 = vld [vmem:[%s1328_s0 + $0x1b0] sm:$0xff]  ;;  %v53_v32 = vld [vmem:[%s1328_s0 + $0x138] sm:$0xff]  ;;  %v54_v36 = vld [vmem:[%s1328_s0 + $0x140] sm:$0xff] }
   0xd   :  { %v69_v33 = vld [vmem:[%s1328_s0 + $0x1b8] sm:$0xff]  ;;  %v70_v37 = vld [vmem:[%s1328_s0 + $0x1c0] sm:$0xff]  ;;  %v23_v38 = vld [vmem:[%s1328_s0 + $0x48] sm:$0xff] }
   0xe   :  { %619 = vmatmul.msk.f32.gmra.mxu0 %vm84_vm0, %v15_v6  ;;  %635 = vmatmul.msk.f32.gmra.mxu1 %vm84_vm0, %v31_v7  ;;  %v39_v39 = vld [vmem:[%s1328_s0 + $0xc8] sm:$0xff]  ;;  %v24_v42 = vld [vmem:[%s1328_s0 + $0x50] sm:$0xff]  ;;  %v25_v46 = vld [vmem:[%s1328_s0 + $0x58] sm:$0xff] }
   0xf   :  { %651 = vmatmul.msk.f32.gmra.mxu2 %vm84_vm0, %v47_v8  ;;  %667 = vmatmul.msk.f32.gmra.mxu3 %vm84_vm0, %v63_v9  ;;  %v55_v40 = vld [vmem:[%s1328_s0 + $0x148] sm:$0xff]  ;;  %v40_v43 = vld [vmem:[%s1328_s0 + $0xd0] sm:$0xff]  ;;  %v41_v47 = vld [vmem:[%s1328_s0 + $0xd8] sm:$0xff] }
  0x10   :  { %v71_v41 = vld [vmem:[%s1328_s0 + $0x1c8] sm:$0xff]  ;;  %v56_v44 = vld [vmem:[%s1328_s0 + $0x150] sm:$0xff]  ;;  %v57_v48 = vld [vmem:[%s1328_s0 + $0x158] sm:$0xff] }
  0x11   :  { %v72_v45 = vld [vmem:[%s1328_s0 + $0x1d0] sm:$0xff]  ;;  %v73_v49 = vld [vmem:[%s1328_s0 + $0x1d8] sm:$0xff]  ;;  %v26_v50 = vld [vmem:[%s1328_s0 + $0x60] sm:$0xff] }
  0x12   :  { %v42_v51 = vld [vmem:[%s1328_s0 + $0xe0] sm:$0xff]  ;;  %v27_v54 = vld [vmem:[%s1328_s0 + $0x68] sm:$0xff]  ;;  %v28_v58 = vld [vmem:[%s1328_s0 + $0x70] sm:$0xff] }
  0x13   :  { %v58_v52 = vld [vmem:[%s1328_s0 + $0x160] sm:$0xff]  ;;  %v43_v55 = vld [vmem:[%s1328_s0 + $0xe8] sm:$0xff]  ;;  %v44_v59 = vld [vmem:[%s1328_s0 + $0xf0] sm:$0xff] }
  0x14   :  { %v74_v53 = vld [vmem:[%s1328_s0 + $0x1e0] sm:$0xff]  ;;  %v59_v56 = vld [vmem:[%s1328_s0 + $0x168] sm:$0xff]  ;;  %v60_v60 = vld [vmem:[%s1328_s0 + $0x170] sm:$0xff] }
  0x15   :  { %v75_v57 = vld [vmem:[%s1328_s0 + $0x1e8] sm:$0xff]  ;;  %v76_v61 = vld [vmem:[%s1328_s0 + $0x1f0] sm:$0xff]  ;;  %v29_v62 = vld [vmem:[%s1328_s0 + $0x78] sm:$0xff] }
  0x16   :  { %620 = vmatmul.msk.f32.gmra.mxu0 %vm84_vm0, %v16_v10  ;;  %636 = vmatmul.msk.f32.gmra.mxu1 %vm84_vm0, %v32_v11  ;;  %v45_v63 = vld [vmem:[%s1328_s0 + $0xf8] sm:$0xff]  ;;  %v1165_v4 = vld [vmem:[%s1329_s2] ss:$0 sm:$0xff] }
  0x17   :  { %652 = vmatmul.msk.f32.gmra.mxu2 %vm84_vm0, %v48_v12  ;;  %668 = vmatmul.msk.f32.gmra.mxu3 %vm84_vm0, %v64_v13  ;;  %v61_v0 = vld [vmem:[%s1328_s0 + $0x178] sm:$0xff] }
  0x18   :  { %v77_v1 = vld [vmem:[%s1328_s0 + $0x1f8] sm:$0xff] }
  0x1e   :  { %621 = vmatmul.msk.f32.gmra.mxu0 %vm84_vm0, %v17_v14  ;;  %637 = vmatmul.msk.f32.gmra.mxu1 %vm84_vm0, %v33_v15 }
  0x1f   :  { %653 = vmatmul.msk.f32.gmra.mxu2 %vm84_vm0, %v49_v16  ;;  %669 = vmatmul.msk.f32.gmra.mxu3 %vm84_vm0, %v65_v17 }
  0x26   :  { %622 = vmatmul.msk.f32.gmra.mxu0 %vm84_vm0, %v18_v18  ;;  %638 = vmatmul.msk.f32.gmra.mxu1 %vm84_vm0, %v34_v19 }
  0x27   :  { %654 = vmatmul.msk.f32.gmra.mxu2 %vm84_vm0, %v50_v20  ;;  %670 = vmatmul.msk.f32.gmra.mxu3 %vm84_vm0, %v66_v21 }
  0x2e   :  { %623 = vmatmul.msk.f32.gmra.mxu0 %vm84_vm0, %v19_v22  ;;  %639 = vmatmul.msk.f32.gmra.mxu1 %vm84_vm0, %v35_v23 }
  0x2f   :  { %655 = vmatmul.msk.f32.gmra.mxu2 %vm84_vm0, %v51_v24  ;;  %671 = vmatmul.msk.f32.gmra.mxu3 %vm84_vm0, %v67_v25 }
  0x36   :  { %624 = vmatmul.msk.f32.gmra.mxu0 %vm84_vm0, %v20_v26  ;;  %640 = vmatmul.msk.f32.gmra.mxu1 %vm84_vm0, %v36_v27 }
  0x37   :  { %656 = vmatmul.msk.f32.gmra.mxu2 %vm84_vm0, %v52_v28  ;;  %672 = vmatmul.msk.f32.gmra.mxu3 %vm84_vm0, %v68_v29 }
  0x3e   :  { %625 = vmatmul.msk.f32.gmra.mxu0 %vm84_vm0, %v21_v30  ;;  %641 = vmatmul.msk.f32.gmra.mxu1 %vm84_vm0, %v37_v31 }
  0x3f   :  { %657 = vmatmul.msk.f32.gmra.mxu2 %vm84_vm0, %v53_v32  ;;  %673 = vmatmul.msk.f32.gmra.mxu3 %vm84_vm0, %v69_v33 }
  0x46   :  { %626 = vmatmul.msk.f32.gmra.mxu0 %vm84_vm0, %v22_v34  ;;  %642 = vmatmul.msk.f32.gmra.mxu1 %vm84_vm0, %v38_v35 }
  0x47   :  { %658 = vmatmul.msk.f32.gmra.mxu2 %vm84_vm0, %v54_v36  ;;  %674 = vmatmul.msk.f32.gmra.mxu3 %vm84_vm0, %v70_v37 }
  0x4e   :  { %627 = vmatmul.msk.f32.gmra.mxu0 %vm84_vm0, %v23_v38  ;;  %643 = vmatmul.msk.f32.gmra.mxu1 %vm84_vm0, %v39_v39 }
  0x4f   :  { %659 = vmatmul.msk.f32.gmra.mxu2 %vm84_vm0, %v55_v40  ;;  %675 = vmatmul.msk.f32.gmra.mxu3 %vm84_vm0, %v71_v41 }
  0x56   :  { %628 = vmatmul.msk.f32.gmra.mxu0 %vm84_vm0, %v24_v42  ;;  %644 = vmatmul.msk.f32.gmra.mxu1 %vm84_vm0, %v40_v43 }
  0x57   :  { %660 = vmatmul.msk.f32.gmra.mxu2 %vm84_vm0, %v56_v44  ;;  %676 = vmatmul.msk.f32.gmra.mxu3 %vm84_vm0, %v72_v45 }
  0x5e   :  { %629 = vmatmul.msk.f32.gmra.mxu0 %vm84_vm0, %v25_v46  ;;  %645 = vmatmul.msk.f32.gmra.mxu1 %vm84_vm0, %v41_v47 }
  0x5f   :  { %661 = vmatmul.msk.f32.gmra.mxu2 %vm84_vm0, %v57_v48  ;;  %677 = vmatmul.msk.f32.gmra.mxu3 %vm84_vm0, %v73_v49 }
  0x66   :  { %630 = vmatmul.msk.f32.gmra.mxu0 %vm84_vm0, %v26_v50  ;;  %646 = vmatmul.msk.f32.gmra.mxu1 %vm84_vm0, %v42_v51 }
  0x67   :  { %662 = vmatmul.msk.f32.gmra.mxu2 %vm84_vm0, %v58_v52  ;;  %678 = vmatmul.msk.f32.gmra.mxu3 %vm84_vm0, %v74_v53 }
  0x6e   :  { %631 = vmatmul.msk.f32.gmra.mxu0 %vm84_vm0, %v27_v54  ;;  %647 = vmatmul.msk.f32.gmra.mxu1 %vm84_vm0, %v43_v55 }
  0x6f   :  { %663 = vmatmul.msk.f32.gmra.mxu2 %vm84_vm0, %v59_v56  ;;  %679 = vmatmul.msk.f32.gmra.mxu3 %vm84_vm0, %v75_v57 }
  0x76   :  { %632 = vmatmul.msk.f32.gmra.mxu0 %vm84_vm0, %v28_v58  ;;  %648 = vmatmul.msk.f32.gmra.mxu1 %vm84_vm0, %v44_v59 }
  0x77   :  { %664 = vmatmul.msk.f32.gmra.mxu2 %vm84_vm0, %v60_v60  ;;  %680 = vmatmul.msk.f32.gmra.mxu3 %vm84_vm0, %v76_v61 }
  0x7e   :  { %633 = vmatmul.msk.f32.gmra.mxu0 %vm84_vm0, %v29_v62  ;;  %649 = vmatmul.msk.f32.gmra.mxu1 %vm84_vm0, %v45_v63 }
  0x7f   :  { %665 = vmatmul.msk.f32.gmra.mxu2 %vm84_vm0, %v61_v0  ;;  %681 = vmatmul.msk.f32.gmra.mxu3 %vm84_vm0, %v77_v1 }
  0x83   :  { %v294_v2 = vpop.f32.mrf.mxu0  ;;  %v342_v3 = vpop.f32.mrf.mxu1 }
  0x84   :  { %v295_v9 = vadd.f32 %v1165_v4, %v294_v2  ;;  %v343_v10 = vadd.f32 %v1165_v4, %v342_v3 }
  0x8a   :  { %v390_v5 = vpop.f32.mrf.mxu2  ;;  %v438_v6 = vpop.f32.mrf.mxu3 }
  0x8b   :  { %v297_v7 = vpop.f32.mrf.mxu0  ;;  %v345_v8 = vpop.f32.mrf.mxu1  ;;  %v391_v17 = vadd.f32 %v1165_v4, %v390_v5  ;;  %v439_v18 = vadd.f32 %v1165_v4, %v438_v6 }
  0x8c   :  { %v298_v11 = vadd.f32 %v1165_v4, %v297_v7  ;;  %v346_v12 = vadd.f32 %v1165_v4, %v345_v8 }
  0x8e   :  { %v685_v13 = vpack.c.bf16 %v298_v11, %v295_v9  ;;  %v725_v14 = vpack.c.bf16 %v346_v12, %v343_v10 }
  0x90   :  { %686 = vst [vmem:[%s1330_s3] sm:$0xff] %v685_v13  }
  0x91   :  { %849 = vst [vmem:[%s1330_s3 + $0x40] sm:$0xff] %v725_v14  }
  0x92   :  { %v393_v15 = vpop.f32.mrf.mxu2  ;;  %v441_v16 = vpop.f32.mrf.mxu3 }
  0x93   :  { %v394_v19 = vadd.f32 %v1165_v4, %v393_v15  ;;  %v442_v20 = vadd.f32 %v1165_v4, %v441_v16  ;;  %v300_v21 = vpop.f32.mrf.mxu0  ;;  %v348_v22 = vpop.f32.mrf.mxu1 }
  0x94   :  { %v301_v29 = vadd.f32 %v1165_v4, %v300_v21  ;;  %v349_v30 = vadd.f32 %v1165_v4, %v348_v22 }
  0x95   :  { %v765_v23 = vpack.c.bf16 %v394_v19, %v391_v17  ;;  %v805_v24 = vpack.c.bf16 %v442_v20, %v439_v18 }
  0x97   :  { %857 = vst [vmem:[%s1330_s3 + $0x80] sm:$0xff] %v765_v23  }
  0x98   :  { %865 = vst [vmem:[%s1330_s3 + $0xc0] sm:$0xff] %v805_v24  }
  0x9a   :  { %v396_v25 = vpop.f32.mrf.mxu2  ;;  %v444_v26 = vpop.f32.mrf.mxu3 }
  0x9b   :  { %v303_v27 = vpop.f32.mrf.mxu0  ;;  %v351_v28 = vpop.f32.mrf.mxu1  ;;  %v397_v37 = vadd.f32 %v1165_v4, %v396_v25  ;;  %v445_v38 = vadd.f32 %v1165_v4, %v444_v26 }
  0x9c   :  { %v304_v31 = vadd.f32 %v1165_v4, %v303_v27  ;;  %v352_v32 = vadd.f32 %v1165_v4, %v351_v28 }
  0x9e   :  { %v690_v33 = vpack.c.bf16 %v304_v31, %v301_v29  ;;  %v730_v34 = vpack.c.bf16 %v352_v32, %v349_v30 }
  0xa0   :  { %842 = vst [vmem:[%s1330_s3 + $0x8] sm:$0xff] %v690_v33  }
  0xa1   :  { %850 = vst [vmem:[%s1330_s3 + $0x48] sm:$0xff] %v730_v34  }
  0xa2   :  { %v399_v35 = vpop.f32.mrf.mxu2  ;;  %v447_v36 = vpop.f32.mrf.mxu3 }
  0xa3   :  { %v400_v39 = vadd.f32 %v1165_v4, %v399_v35  ;;  %v448_v40 = vadd.f32 %v1165_v4, %v447_v36  ;;  %v306_v41 = vpop.f32.mrf.mxu0  ;;  %v354_v42 = vpop.f32.mrf.mxu1 }
  0xa4   :  { %v307_v49 = vadd.f32 %v1165_v4, %v306_v41  ;;  %v355_v50 = vadd.f32 %v1165_v4, %v354_v42 }
  0xa5   :  { %v770_v43 = vpack.c.bf16 %v400_v39, %v397_v37  ;;  %v810_v44 = vpack.c.bf16 %v448_v40, %v445_v38 }
  0xa7   :  { %858 = vst [vmem:[%s1330_s3 + $0x88] sm:$0xff] %v770_v43  }
  0xa8   :  { %866 = vst [vmem:[%s1330_s3 + $0xc8] sm:$0xff] %v810_v44  }
  0xaa   :  { %v402_v45 = vpop.f32.mrf.mxu2  ;;  %v450_v46 = vpop.f32.mrf.mxu3 }
  0xab   :  { %v309_v47 = vpop.f32.mrf.mxu0  ;;  %v357_v48 = vpop.f32.mrf.mxu1  ;;  %v403_v57 = vadd.f32 %v1165_v4, %v402_v45  ;;  %v451_v58 = vadd.f32 %v1165_v4, %v450_v46 }
  0xac   :  { %v310_v51 = vadd.f32 %v1165_v4, %v309_v47  ;;  %v358_v52 = vadd.f32 %v1165_v4, %v357_v48 }
  0xae   :  { %v695_v53 = vpack.c.bf16 %v310_v51, %v307_v49  ;;  %v735_v54 = vpack.c.bf16 %v358_v52, %v355_v50 }
  0xb0   :  { %843 = vst [vmem:[%s1330_s3 + $0x10] sm:$0xff] %v695_v53  }
  0xb1   :  { %851 = vst [vmem:[%s1330_s3 + $0x50] sm:$0xff] %v735_v54  }
  0xb2   :  { %v405_v55 = vpop.f32.mrf.mxu2  ;;  %v453_v56 = vpop.f32.mrf.mxu3 }
  0xb3   :  { %v406_v59 = vadd.f32 %v1165_v4, %v405_v55  ;;  %v454_v60 = vadd.f32 %v1165_v4, %v453_v56  ;;  %v312_v61 = vpop.f32.mrf.mxu0  ;;  %v360_v62 = vpop.f32.mrf.mxu1 }
  0xb4   :  { %v313_v6 = vadd.f32 %v1165_v4, %v312_v61  ;;  %v361_v7 = vadd.f32 %v1165_v4, %v360_v62 }
  0xb5   :  { %v775_v63 = vpack.c.bf16 %v406_v59, %v403_v57  ;;  %v815_v0 = vpack.c.bf16 %v454_v60, %v451_v58 }
  0xb7   :  { %859 = vst [vmem:[%s1330_s3 + $0x90] sm:$0xff] %v775_v63  }
  0xb8   :  { %867 = vst [vmem:[%s1330_s3 + $0xd0] sm:$0xff] %v815_v0  }
  0xba   :  { %v408_v1 = vpop.f32.mrf.mxu2  ;;  %v456_v2 = vpop.f32.mrf.mxu3 }
  0xbb   :  { %v315_v3 = vpop.f32.mrf.mxu0  ;;  %v363_v5 = vpop.f32.mrf.mxu1  ;;  %v409_v14 = vadd.f32 %v1165_v4, %v408_v1  ;;  %v457_v15 = vadd.f32 %v1165_v4, %v456_v2 }
  0xbc   :  { %v316_v8 = vadd.f32 %v1165_v4, %v315_v3  ;;  %v364_v9 = vadd.f32 %v1165_v4, %v363_v5 }
  0xbe   :  { %v700_v10 = vpack.c.bf16 %v316_v8, %v313_v6  ;;  %v740_v11 = vpack.c.bf16 %v364_v9, %v361_v7 }
  0xc0   :  { %844 = vst [vmem:[%s1330_s3 + $0x18] sm:$0xff] %v700_v10  }
  0xc1   :  { %852 = vst [vmem:[%s1330_s3 + $0x58] sm:$0xff] %v740_v11  }
  0xc2   :  { %v411_v12 = vpop.f32.mrf.mxu2  ;;  %v459_v13 = vpop.f32.mrf.mxu3 }
  0xc3   :  { %v412_v16 = vadd.f32 %v1165_v4, %v411_v12  ;;  %v460_v17 = vadd.f32 %v1165_v4, %v459_v13  ;;  %v318_v18 = vpop.f32.mrf.mxu0  ;;  %v366_v19 = vpop.f32.mrf.mxu1 }
  0xc4   :  { %v319_v26 = vadd.f32 %v1165_v4, %v318_v18  ;;  %v367_v27 = vadd.f32 %v1165_v4, %v366_v19 }
  0xc5   :  { %v780_v20 = vpack.c.bf16 %v412_v16, %v409_v14  ;;  %v820_v21 = vpack.c.bf16 %v460_v17, %v457_v15 }
  0xc7   :  { %860 = vst [vmem:[%s1330_s3 + $0x98] sm:$0xff] %v780_v20  }
  0xc8   :  { %868 = vst [vmem:[%s1330_s3 + $0xd8] sm:$0xff] %v820_v21  }
  0xca   :  { %v414_v22 = vpop.f32.mrf.mxu2  ;;  %v462_v23 = vpop.f32.mrf.mxu3 }
  0xcb   :  { %v321_v24 = vpop.f32.mrf.mxu0  ;;  %v369_v25 = vpop.f32.mrf.mxu1  ;;  %v415_v34 = vadd.f32 %v1165_v4, %v414_v22  ;;  %v463_v35 = vadd.f32 %v1165_v4, %v462_v23 }
  0xcc   :  { %v322_v28 = vadd.f32 %v1165_v4, %v321_v24  ;;  %v370_v29 = vadd.f32 %v1165_v4, %v369_v25 }
  0xce   :  { %v705_v30 = vpack.c.bf16 %v322_v28, %v319_v26  ;;  %v745_v31 = vpack.c.bf16 %v370_v29, %v367_v27 }
  0xd0   :  { %845 = vst [vmem:[%s1330_s3 + $0x20] sm:$0xff] %v705_v30  }
  0xd1   :  { %853 = vst [vmem:[%s1330_s3 + $0x60] sm:$0xff] %v745_v31  }
  0xd2   :  { %v417_v32 = vpop.f32.mrf.mxu2  ;;  %v465_v33 = vpop.f32.mrf.mxu3 }
  0xd3   :  { %v418_v36 = vadd.f32 %v1165_v4, %v417_v32  ;;  %v466_v37 = vadd.f32 %v1165_v4, %v465_v33  ;;  %v324_v38 = vpop.f32.mrf.mxu0  ;;  %v372_v39 = vpop.f32.mrf.mxu1 }
  0xd4   :  { %v325_v46 = vadd.f32 %v1165_v4, %v324_v38  ;;  %v373_v47 = vadd.f32 %v1165_v4, %v372_v39 }
  0xd5   :  { %v785_v40 = vpack.c.bf16 %v418_v36, %v415_v34  ;;  %v825_v41 = vpack.c.bf16 %v466_v37, %v463_v35 }
  0xd7   :  { %861 = vst [vmem:[%s1330_s3 + $0xa0] sm:$0xff] %v785_v40  }
  0xd8   :  { %869 = vst [vmem:[%s1330_s3 + $0xe0] sm:$0xff] %v825_v41  }
  0xda   :  { %v420_v42 = vpop.f32.mrf.mxu2  ;;  %v468_v43 = vpop.f32.mrf.mxu3 }
  0xdb   :  { %v327_v44 = vpop.f32.mrf.mxu0  ;;  %v375_v45 = vpop.f32.mrf.mxu1  ;;  %v421_v54 = vadd.f32 %v1165_v4, %v420_v42  ;;  %v469_v55 = vadd.f32 %v1165_v4, %v468_v43 }
  0xdc   :  { %v328_v48 = vadd.f32 %v1165_v4, %v327_v44  ;;  %v376_v49 = vadd.f32 %v1165_v4, %v375_v45 }
  0xde   :  { %v710_v50 = vpack.c.bf16 %v328_v48, %v325_v46  ;;  %v750_v51 = vpack.c.bf16 %v376_v49, %v373_v47 }
  0xe0   :  { %846 = vst [vmem:[%s1330_s3 + $0x28] sm:$0xff] %v710_v50  }
  0xe1   :  { %854 = vst [vmem:[%s1330_s3 + $0x68] sm:$0xff] %v750_v51  }
  0xe2   :  { %v423_v52 = vpop.f32.mrf.mxu2  ;;  %v471_v53 = vpop.f32.mrf.mxu3 }
  0xe3   :  { %v424_v56 = vadd.f32 %v1165_v4, %v423_v52  ;;  %v472_v57 = vadd.f32 %v1165_v4, %v471_v53  ;;  %v330_v58 = vpop.f32.mrf.mxu0  ;;  %v378_v59 = vpop.f32.mrf.mxu1 }
  0xe4   :  { %v331_v2 = vadd.f32 %v1165_v4, %v330_v58  ;;  %v379_v3 = vadd.f32 %v1165_v4, %v378_v59 }
  0xe5   :  { %v790_v60 = vpack.c.bf16 %v424_v56, %v421_v54  ;;  %v830_v61 = vpack.c.bf16 %v472_v57, %v469_v55 }
  0xe7   :  { %862 = vst [vmem:[%s1330_s3 + $0xa8] sm:$0xff] %v790_v60  }
  0xe8   :  { %870 = vst [vmem:[%s1330_s3 + $0xe8] sm:$0xff] %v830_v61  }
  0xea   :  { %v426_v62 = vpop.f32.mrf.mxu2  ;;  %v474_v63 = vpop.f32.mrf.mxu3 }
  0xeb   :  { %v333_v0 = vpop.f32.mrf.mxu0  ;;  %v381_v1 = vpop.f32.mrf.mxu1  ;;  %v427_v11 = vadd.f32 %v1165_v4, %v426_v62  ;;  %v475_v12 = vadd.f32 %v1165_v4, %v474_v63 }
  0xec   :  { %v334_v5 = vadd.f32 %v1165_v4, %v333_v0  ;;  %v382_v6 = vadd.f32 %v1165_v4, %v381_v1 }
  0xee   :  { %v715_v7 = vpack.c.bf16 %v334_v5, %v331_v2  ;;  %v755_v8 = vpack.c.bf16 %v382_v6, %v379_v3 }
  0xf0   :  { %847 = vst [vmem:[%s1330_s3 + $0x30] sm:$0xff] %v715_v7  }
  0xf1   :  { %855 = vst [vmem:[%s1330_s3 + $0x70] sm:$0xff] %v755_v8  }
  0xf2   :  { %v429_v9 = vpop.f32.mrf.mxu2  ;;  %v477_v10 = vpop.f32.mrf.mxu3 }
  0xf3   :  { %v430_v13 = vadd.f32 %v1165_v4, %v429_v9  ;;  %v478_v14 = vadd.f32 %v1165_v4, %v477_v10  ;;  %v336_v15 = vpop.f32.mrf.mxu0  ;;  %v384_v16 = vpop.f32.mrf.mxu1 }
  0xf4   :  { %v337_v23 = vadd.f32 %v1165_v4, %v336_v15  ;;  %v385_v24 = vadd.f32 %v1165_v4, %v384_v16 }
  0xf5   :  { %v795_v17 = vpack.c.bf16 %v430_v13, %v427_v11  ;;  %v835_v18 = vpack.c.bf16 %v478_v14, %v475_v12 }
  0xf7   :  { %863 = vst [vmem:[%s1330_s3 + $0xb0] sm:$0xff] %v795_v17  }
  0xf8   :  { %871 = vst [vmem:[%s1330_s3 + $0xf0] sm:$0xff] %v835_v18  }
  0xfa   :  { %v432_v19 = vpop.f32.mrf.mxu2  ;;  %v480_v20 = vpop.f32.mrf.mxu3 }
  0xfb   :  { %v339_v21 = vpop.f32.mrf.mxu0  ;;  %v387_v22 = vpop.f32.mrf.mxu1  ;;  %v433_v31 = vadd.f32 %v1165_v4, %v432_v19  ;;  %v481_v32 = vadd.f32 %v1165_v4, %v480_v20 }
  0xfc   :  { %v340_v25 = vadd.f32 %v1165_v4, %v339_v21  ;;  %v388_v26 = vadd.f32 %v1165_v4, %v387_v22 }
  0xfe   :  { %v720_v27 = vpack.c.bf16 %v340_v25, %v337_v23  ;;  %v760_v28 = vpack.c.bf16 %v388_v26, %v385_v24 }
 0x100   :  { %848 = vst [vmem:[%s1330_s3 + $0x38] sm:$0xff] %v720_v27  }
 0x101   :  { %856 = vst [vmem:[%s1330_s3 + $0x78] sm:$0xff] %v760_v28  }
 0x102   :  { %v435_v29 = vpop.f32.mrf.mxu2  ;;  %v483_v30 = vpop.f32.mrf.mxu3 }
 0x103   :  { %v436_v33 = vadd.f32 %v1165_v4, %v435_v29  ;;  %v484_v34 = vadd.f32 %v1165_v4, %v483_v30 }
 0x105   :  { %v800_v35 = vpack.c.bf16 %v436_v33, %v433_v31  ;;  %v840_v36 = vpack.c.bf16 %v484_v34, %v481_v32 }
 0x107   :  { %864 = vst [vmem:[%s1330_s3 + $0xb8] sm:$0xff] %v800_v35  }
 0x108   :  { %872 = vst [vmem:[%s1330_s3 + $0xf8] sm:$0xff] %v840_v36  }

// kernel: contextual_attention_forward.4
= control target key start
LH: loop header
LB: loop body
LE: loop exit
PB: predicated region body
PF: predicated region fallthrough
CT: control target
= control target key end

     0   :  { %s1445_s12 = smov 0   ;;  %s1447_s13 = smov 0   ;;  %s1657_s0 = inlined_call_operand.vmem [shape: bf16[2,16,196], index: 0, kind: input, shape index: {}]   ;;  %s1658_s1 = inlined_call_operand.vmem [shape: bf16[2,196,256], index: 1, kind: input, shape index: {}]   ;;  %s1659_s2 = inlined_call_operand.vmem [shape: bf16[2,256,196], index: 2, kind: input, shape index: {}]   ;;  %s1660_s3 = inlined_call_operand.vmem [shape: f32[2,16,196], index: 3, kind: output, shape index: {}]  }
   0x1   :  { %s1449_s14 = smov 0  }
   0x2 LB: > { %s32_s15 = sadd.s32 1, %s1416_s13  ;;  %p1046_p0 = scmp.ge.s32.totalorder %s1420_s14, 1  ;;  %s1420_s14 = sphi %s1449_s14, %s13_s14   ;;  %s1416_s13 = sphi %s1447_s13, %s1662_s13   ;;  %s1412_s12 = sphi %s1445_s12, %s1661_s12  }
   0x3   : > { %p34_p1 = scmp.ge.s32.totalorder %s32_s15, 2  ;;  %p201_p2 = scmp.lt.s32.totalorder %s1420_s14, 3 }
   0x5   : > { %s1664_s15 = smov (%p34_p1, %s32_s15), 0  ;;  %p202_p3 = pnand %p1046_p0, %p201_p2 }
   0x6   : > { %p255_p4 = scmp.lt.s32.totalorder (!%p202_p3), %s1412_s12, 1 }
   0x7   : > { %205 = sbr.rel (%p202_p3) target bundleno = 697 (0x2b9), region = 32 }
   0xc   : > { %vm308_vm0 = vcmask 556032   ;;  %v1422_v0 = vmov 0.0   ;;  %s1666_s12 = smov (!%p255_p4, %s1412_s12), 1  ;;  %vm477_vm1 = vcmask 1041408   ;;  %vm302_vm2 = vcmask 7168  }
   0xd   : > { %309 = vst.msk [vmem:[#allocation4 + $0x8] sm:$0xff] %vm308_vm0, %v1422_v0  ;;  %s1351_s16 = smul.u32 200, %s1666_s12  ;;  %s1290_s20 = sshll.u32 %s1666_s12, 4 }
   0xe   : > { %311 = vst.msk [vmem:[#allocation4 + $0x18] sm:$0xff] %vm308_vm0, %v1422_v0  ;;  %s1515_s23 = scalar_lea.vmem %s1657_s0, %s1290_s20  ;;  %s1291_s24 = sshll.u32 %s1666_s12, 8 }
   0xf   : > { %s1473_s19 = scalar_lea.vmem %s1658_s1, %s1351_s16  ;;  %305 = vst.msk [vmem:[#allocation3] sm:$0xff] %vm302_vm2, %v1422_v0  ;;  %s1558_s27 = scalar_lea.vmem %s1659_s2, %s1291_s24 }
  0x10   : > { %v1120_v1 = vld [vmem:[%s1473_s19 + $0x70] sm:$0xf]  ;;  %v1310_v2 = vld [vmem:[%s1473_s19 + $0x74] sm:$0xf0]  ;;  %v1309_v3 = vld [vmem:[%s1473_s19 + $0x74] sm:$0xf] }
  0x11   : > { %v1121_v4 = vor.u32 %v1310_v2, %v1120_v1  ;;  %v1122_v5 = vld [vmem:[%s1473_s19 + $0x78] sm:$0xf0]  ;;  %v1112_v6 = vld [vmem:[%s1473_s19 + $0x60] sm:$0xf]  ;;  %v1308_v7 = vld [vmem:[%s1473_s19 + $0x64] sm:$0xf0] }
  0x12   : > { %v1125_v8 = vor.u32 %v1309_v3, %v1122_v5  ;;  %v1307_v9 = vld [vmem:[%s1473_s19 + $0x64] sm:$0xf]  ;;  %v1114_v10 = vld [vmem:[%s1473_s19 + $0x68] sm:$0xf0]  ;;  %v1113_v12 = vor.u32 %v1308_v7, %v1112_v6  ;;  %v1104_v16 = vld [vmem:[%s1473_s19 + $0x50] sm:$0xf] }
  0x13   : > { %v338_v11 = vld [vmem:[%s1473_s19 + $0xc0] sm:$0x33]  ;;  %484 = vmatpush.bf16.msra.mxu0 %v1121_v4  ;;  %v1117_v15 = vor.u32 %v1307_v9, %v1114_v10  ;;  %v1306_v17 = vld [vmem:[%s1473_s19 + $0x54] sm:$0xf0]  ;;  %v1305_v18 = vld [vmem:[%s1473_s19 + $0x54] sm:$0xf] }
  0x14   : > { %v422_v13 = vunpack.c.h.b16 %v338_v11  ;;  %v421_v14 = vunpack.c.l.b16 %v338_v11  ;;  %512 = vmatpush.bf16.msra.mxu2 %v1125_v8  ;;  %v1106_v20 = vld [vmem:[%s1473_s19 + $0x58] sm:$0xf0]  ;;  %v1317_v21 = vld [vmem:[%s1473_s19 + $0xb4] sm:$0xf]  ;;  %v1105_v25 = vor.u32 %v1306_v17, %v1104_v16  ;;  %v1152_v27 = vld [vmem:[%s1473_s19 + $0xb0] sm:$0xf] }
  0x15   : > { %v1154_v22 = vld [vmem:[%s1473_s19 + $0xb8] sm:$0xf0]  ;;  %v1318_v28 = vld [vmem:[%s1473_s19 + $0xb4] sm:$0xf0]  ;;  %v1109_v29 = vor.u32 %v1305_v18, %v1106_v20  ;;  %v1096_v31 = vld [vmem:[%s1473_s19 + $0x40] sm:$0xf] }
  0x16   : > { %v448_v19 = vpack.c.b16 %v422_v13, %v422_v13  ;;  %v447_v23 = vpack.c.b16 %v421_v14, %v421_v14  ;;  %v1157_v30 = vor.u32 %v1317_v21, %v1154_v22  ;;  %v1304_v32 = vld [vmem:[%s1473_s19 + $0x44] sm:$0xf0]  ;;  %v1303_v33 = vld [vmem:[%s1473_s19 + $0x44] sm:$0xf]  ;;  %v1098_v34 = vld [vmem:[%s1473_s19 + $0x48] sm:$0xf0]  ;;  %v1153_v37 = vor.u32 %v1318_v28, %v1152_v27 }
  0x17   : > { %485 = vmatpush.bf16.msra.mxu0 %v1113_v12  ;;  %v1315_v35 = vld [vmem:[%s1473_s19 + $0xa4] sm:$0xf]  ;;  %v1146_v36 = vld [vmem:[%s1473_s19 + $0xa8] sm:$0xf0]  ;;  %v1144_v38 = vld [vmem:[%s1473_s19 + $0xa0] sm:$0xf]  ;;  %v1097_v40 = vor.u32 %v1304_v32, %v1096_v31  ;;  %v1101_v41 = vor.u32 %v1303_v33, %v1098_v34 }
  0x18   : > { %v482_v24 = vsel %vm477_vm1, %v448_v19, 0  ;;  %v479_v26 = vsel %vm477_vm1, %v447_v23, 0  ;;  %513 = vmatpush.bf16.msra.mxu2 %v1117_v15  ;;  %v1316_v39 = vld [vmem:[%s1473_s19 + $0xa4] sm:$0xf0]  ;;  %v1149_v42 = vor.u32 %v1315_v35, %v1146_v36  ;;  %v1088_v43 = vld [vmem:[%s1473_s19 + $0x30] sm:$0xf] }
  0x19   : > { %529 = vmatpush.bf16.msra.mxu3 %v482_v24  ;;  %501 = vmatpush.bf16.msra.mxu1 %v479_v26  ;;  %v1302_v44 = vld [vmem:[%s1473_s19 + $0x34] sm:$0xf0]  ;;  %v1301_v45 = vld [vmem:[%s1473_s19 + $0x34] sm:$0xf]  ;;  %v1090_v46 = vld [vmem:[%s1473_s19 + $0x38] sm:$0xf0]  ;;  %v1145_v49 = vor.u32 %v1316_v39, %v1144_v38 }
  0x1a   : > { %v1313_v47 = vld [vmem:[%s1473_s19 + $0x94] sm:$0xf]  ;;  %v1138_v48 = vld [vmem:[%s1473_s19 + $0x98] sm:$0xf0]  ;;  %v1136_v50 = vld [vmem:[%s1473_s19 + $0x90] sm:$0xf]  ;;  %v1089_v52 = vor.u32 %v1302_v44, %v1088_v43  ;;  %v1093_v53 = vor.u32 %v1301_v45, %v1090_v46 }
  0x1b   : > { %486 = vmatpush.bf16.msra.mxu0 %v1105_v25  ;;  %v1314_v51 = vld [vmem:[%s1473_s19 + $0x94] sm:$0xf0]  ;;  %v1141_v54 = vor.u32 %v1313_v47, %v1138_v48  ;;  %v1080_v55 = vld [vmem:[%s1473_s19 + $0x20] sm:$0xf]  ;;  %v1300_v56 = vld [vmem:[%s1473_s19 + $0x24] sm:$0xf0] }
  0x1c   : > { %514 = vmatpush.bf16.msra.mxu2 %v1109_v29  ;;  %v1299_v57 = vld [vmem:[%s1473_s19 + $0x24] sm:$0xf]  ;;  %v1082_v58 = vld [vmem:[%s1473_s19 + $0x28] sm:$0xf0]  ;;  %v1137_v61 = vor.u32 %v1314_v51, %v1136_v50  ;;  %v1128_v62 = vld [vmem:[%s1473_s19 + $0x80] sm:$0xf]  ;;  %v1081_v1 = vor.u32 %v1300_v56, %v1080_v55 }
  0x1d   : > { %530 = vmatpush.bf16.msra.mxu3 %v1157_v30  ;;  %502 = vmatpush.bf16.msra.mxu1 %v1153_v37  ;;  %v1311_v59 = vld [vmem:[%s1473_s19 + $0x84] sm:$0xf]  ;;  %v1130_v60 = vld [vmem:[%s1473_s19 + $0x88] sm:$0xf0]  ;;  %v1312_v63 = vld [vmem:[%s1473_s19 + $0x84] sm:$0xf0]  ;;  %v1085_v3 = vor.u32 %v1299_v57, %v1082_v58 }
  0x1e   : > { %v1293_v2 = vld [vmem:[%s1515_s23 + $0x4] sm:$0xf]  ;;  %v1133_v4 = vor.u32 %v1311_v59, %v1130_v60  ;;  %v1058_v5 = vld [vmem:[%s1515_s23 + $0x8] sm:$0xf0]  ;;  %v1072_v6 = vld [vmem:[%s1473_s19 + $0x10] sm:$0xf]  ;;  %v1129_v10 = vor.u32 %v1312_v63, %v1128_v62 }
  0x1f   : > { %487 = vmatpush.bf16.msra.mxu0 %v1097_v40  ;;  %v1298_v7 = vld [vmem:[%s1473_s19 + $0x14] sm:$0xf0]  ;;  %v1297_v8 = vld [vmem:[%s1473_s19 + $0x14] sm:$0xf]  ;;  %v1074_v9 = vld [vmem:[%s1473_s19 + $0x18] sm:$0xf0]  ;;  %v1061_v11 = vor.u32 %v1293_v2, %v1058_v5 }
  0x20   : > { %515 = vmatpush.bf16.msra.mxu2 %v1101_v41  ;;  %v1073_v12 = vor.u32 %v1298_v7, %v1072_v6  ;;  %v1077_v13 = vor.u32 %v1297_v8, %v1074_v9  ;;  %v1064_v14 = vld [vmem:[%s1473_s19] sm:$0xf]  ;;  %v1296_v15 = vld [vmem:[%s1473_s19 + $0x4] sm:$0xf0]  ;;  %v1295_v16 = vld [vmem:[%s1473_s19 + $0x4] sm:$0xf] }
  0x21   : > { %531 = vmatpush.bf16.msra.mxu3 %v1149_v42  ;;  %503 = vmatpush.bf16.msra.mxu1 %v1145_v49  ;;  %v1066_v17 = vld [vmem:[%s1473_s19 + $0x8] sm:$0xf0]  ;;  %v1065_v18 = vor.u32 %v1296_v15, %v1064_v14  ;;  %v1056_v19 = vld [vmem:[%s1515_s23] sm:$0xf]  ;;  %v1294_v20 = vld [vmem:[%s1515_s23 + $0x4] sm:$0xf0] }
  0x22   : > { %v1069_v21 = vor.u32 %v1295_v16, %v1066_v17  ;;  %v1057_v22 = vor.u32 %v1294_v20, %v1056_v19  ;;  %v1423_v23 = vmov -inf   ;;  %306 = vst.msk [vmem:[#allocation3 + $0x8] sm:$0xff] %vm302_vm2, %v1422_v0  ;;  %v1424_v41 = vmov 0   ;;  %v1218_v42 = vld [vmem:[%s1558_s27 + $0x70] sm:$0xf]  ;;  %s1292_s28 = sshll.u32 %s1666_s12, 5 }
  0x23   : > { %488 = vmatpush.bf16.msra.mxu0 %v1089_v52  ;;  %303 = vst.msk [vmem:[#allocation2] sm:$0xff] %vm302_vm2, %v1423_v23  ;;  %1379 = vset.pattern.permute.xlu1 %v1424_v41  ;;  %v1334_v43 = vld [vmem:[%s1558_s27 + $0x74] sm:$0xf0]  ;;  %v1282_v44 = vld [vmem:[%s1558_s27 + $0xf0] sm:$0xf]  ;;  %s295_s4 = scalar_lea.vmem %s1660_s3, %s1292_s28 }
  0x24   : > { %516 = vmatpush.bf16.msra.mxu2 %v1093_v53  ;;  %304 = vst.msk [vmem:[#allocation2 + $0x8] sm:$0xff] %vm302_vm2, %v1423_v23  ;;  %1380 = vset.pattern.permute.xlu0 %v1424_v41  ;;  %v1219_v45 = vor.u32 %v1334_v43, %v1218_v42  ;;  %v1350_v46 = vld [vmem:[%s1558_s27 + $0xf4] sm:$0xf0]  ;;  %v1333_v47 = vld [vmem:[%s1558_s27 + $0x74] sm:$0xf] }
  0x25   : > { %532 = vmatpush.bf16.msra.mxu3 %v1141_v54  ;;  %504 = vmatpush.bf16.msra.mxu1 %v1137_v61  ;;  %v1220_v48 = vld [vmem:[%s1558_s27 + $0x78] sm:$0xf0]  ;;  %v1283_v49 = vor.u32 %v1350_v46, %v1282_v44  ;;  %v1349_v51 = vld [vmem:[%s1558_s27 + $0xf4] sm:$0xf]  ;;  %v1210_v53 = vld [vmem:[%s1558_s27 + $0x60] sm:$0xf] }
  0x26   : > { %1381 = vset.pattern.permute.xlu2 %v1424_v41  ;;  %v1223_v50 = vor.u32 %v1333_v47, %v1220_v48  ;;  %v1284_v52 = vld [vmem:[%s1558_s27 + $0xf8] sm:$0xf0]  ;;  %v1332_v55 = vld [vmem:[%s1558_s27 + $0x64] sm:$0xf0]  ;;  %v1274_v56 = vld [vmem:[%s1558_s27 + $0xe0] sm:$0xf] }
  0x27   : > { %489 = vmatpush.bf16.msra.mxu0 %v1081_v1  ;;  %v1287_v54 = vor.u32 %v1349_v51, %v1284_v52  ;;  %v1348_v57 = vld [vmem:[%s1558_s27 + $0xe4] sm:$0xf0]  ;;  %v1211_v58 = vor.u32 %v1332_v55, %v1210_v53  ;;  %v1331_v60 = vld [vmem:[%s1558_s27 + $0x64] sm:$0xf]  ;;  %v1212_v61 = vld [vmem:[%s1558_s27 + $0x68] sm:$0xf0] }
  0x28   : > { %517 = vmatpush.bf16.msra.mxu2 %v1085_v3  ;;  %v1275_v59 = vor.u32 %v1348_v57, %v1274_v56  ;;  %v1347_v62 = vld [vmem:[%s1558_s27 + $0xe4] sm:$0xf]  ;;  %v1215_v63 = vor.u32 %v1331_v60, %v1212_v61  ;;  %v1276_v1 = vld [vmem:[%s1558_s27 + $0xe8] sm:$0xf0]  ;;  %v1202_v2 = vld [vmem:[%s1558_s27 + $0x50] sm:$0xf] }
  0x29   : > { %533 = vmatpush.bf16.msra.mxu3 %v1133_v4  ;;  %505 = vmatpush.bf16.msra.mxu1 %v1129_v10  ;;  %v1330_v3 = vld [vmem:[%s1558_s27 + $0x54] sm:$0xf0]  ;;  %v1279_v4 = vor.u32 %v1347_v62, %v1276_v1  ;;  %v1266_v5 = vld [vmem:[%s1558_s27 + $0xd0] sm:$0xf]  ;;  %v1329_v7 = vld [vmem:[%s1558_s27 + $0x54] sm:$0xf] }
  0x2a   : > { %v1346_v6 = vld [vmem:[%s1558_s27 + $0xd4] sm:$0xf0]  ;;  %v1203_v8 = vor.u32 %v1330_v3, %v1202_v2  ;;  %v1204_v9 = vld [vmem:[%s1558_s27 + $0x58] sm:$0xf0]  ;;  %v1345_v10 = vld [vmem:[%s1558_s27 + $0xd4] sm:$0xf] }
  0x2b   : > { %490 = vmatpush.bf16.msra.mxu0 %v1073_v12  ;;  %v544_v12 = vld [vmem:[#allocation2] sm:$0xff]  ;;  %v1207_v14 = vor.u32 %v1329_v7, %v1204_v9  ;;  %v545_v20 = vld [vmem:[#allocation2 + $0x8] sm:$0xff]  ;;  %v1186_v42 = vld [vmem:[%s1558_s27 + $0x30] sm:$0xf] }
  0x2c   : > { %1159 = vmatmul.msk.bf16.vlgmr.msra.gmra.mxu3 %vm308_vm0, %v1061_v11  ;;  %518 = vmatpush.bf16.msra.mxu2 %v1077_v13  ;;  %v1267_v13 = vor.u32 %v1346_v6, %v1266_v5  ;;  %v1326_v43 = vld [vmem:[%s1558_s27 + $0x34] sm:$0xf0]  ;;  %v1250_v44 = vld [vmem:[%s1558_s27 + $0xb0] sm:$0xf]  ;;  %v1325_v47 = vld [vmem:[%s1558_s27 + $0x34] sm:$0xf] }
  0x2d   : > { %1158 = vmatmul.msk.bf16.vlgmr.msra.gmra.mxu1 %vm308_vm0, %v1061_v11  ;;  %823 = vmatpush.bf16.msrb.mxu3 %v1283_v49  ;;  %v1268_v11 = vld [vmem:[%s1558_s27 + $0xd8] sm:$0xf0]  ;;  %v1342_v46 = vld [vmem:[%s1558_s27 + $0xb4] sm:$0xf0]  ;;  %v1341_v51 = vld [vmem:[%s1558_s27 + $0xb4] sm:$0xf] }
  0x2e   : > { %809 = vmatpush.bf16.msrb.mxu1 %v1219_v45  ;;  %v1271_v15 = vor.u32 %v1345_v10, %v1268_v11  ;;  %v1187_v45 = vor.u32 %v1326_v43, %v1186_v42  ;;  %v1188_v48 = vld [vmem:[%s1558_s27 + $0x38] sm:$0xf0]  ;;  %v1251_v49 = vor.u32 %v1342_v46, %v1250_v44  ;;  %v1324_v55 = vld [vmem:[%s1558_s27 + $0x24] sm:$0xf0]  ;;  %v1242_v56 = vld [vmem:[%s1558_s27 + $0xa0] sm:$0xf] }
  0x2f   : > { %491 = vmatpush.bf16.msra.mxu0 %v1065_v18  ;;  %v1252_v52 = vld [vmem:[%s1558_s27 + $0xb8] sm:$0xf0]  ;;  %v1180_v60 = vld [vmem:[%s1558_s27 + $0x28] sm:$0xf0]  ;;  %v1170_v3 = vld [vmem:[%s1558_s27 + $0x10] sm:$0xf] }
  0x30   : > { %519 = vmatpush.bf16.msra.mxu2 %v1069_v21  ;;  %v1255_v53 = vor.u32 %v1341_v51, %v1252_v52  ;;  %v1244_v1 = vld [vmem:[%s1558_s27 + $0xa8] sm:$0xf0]  ;;  %v1234_v5 = vld [vmem:[%s1558_s27 + $0x90] sm:$0xf]  ;;  %v1338_v7 = vld [vmem:[%s1558_s27 + $0x94] sm:$0xf0] }
  0x31   : > { %824 = vmatpush.bf16.msrb.mxu3 %v1275_v59  ;;  %v1323_v59 = vld [vmem:[%s1558_s27 + $0x24] sm:$0xf]  ;;  %v1172_v9 = vld [vmem:[%s1558_s27 + $0x18] sm:$0xf0]  ;;  %v1235_v10 = vor.u32 %v1338_v7, %v1234_v5 }
  0x32   : > { %492 = vmatmul.bf16.vlgmr.msra.gmra.mxu0 %v1057_v22  ;;  %810 = vmatpush.bf16.msrb.mxu1 %v1211_v58  ;;  %v1340_v58 = vld [vmem:[%s1558_s27 + $0xa4] sm:$0xf0]  ;;  %v1183_v62 = vor.u32 %v1323_v59, %v1180_v60  ;;  %v600_v5 = vld [vmem:[#allocation4 + $0x18] sm:$0xff] }
  0x33   : > { %520 = vmatmul.bf16.vlgmr.msra.gmra.mxu2 %v1057_v22  ;;  %837 = vmatpush.bf16.msrb.mxu0 %v1223_v50  ;;  %v1191_v50 = vor.u32 %v1325_v47, %v1188_v48  ;;  %v1243_v61 = vor.u32 %v1340_v58, %v1242_v56 }
  0x34   : > { %851 = vmatpush.bf16.msrb.mxu2 %v1287_v54  ;;  %v1178_v54 = vld [vmem:[%s1558_s27 + $0x20] sm:$0xf] }
  0x35   : > { %825 = vmatpush.bf16.msrb.mxu3 %v1267_v13  ;;  %v1179_v57 = vor.u32 %v1324_v55, %v1178_v54  ;;  %v1236_v13 = vld [vmem:[%s1558_s27 + $0x98] sm:$0xf0] }
  0x36   : > { %811 = vmatpush.bf16.msrb.mxu1 %v1203_v8  ;;  %v1321_v8 = vld [vmem:[%s1558_s27 + $0x14] sm:$0xf] }
  0x37   : > { %838 = vmatpush.bf16.msrb.mxu0 %v1215_v63  ;;  %v1339_v63 = vld [vmem:[%s1558_s27 + $0xa4] sm:$0xf]  ;;  %v1175_v11 = vor.u32 %v1321_v8, %v1172_v9 }
  0x38   : > { %852 = vmatpush.bf16.msrb.mxu2 %v1279_v4  ;;  %v1247_v2 = vor.u32 %v1339_v63, %v1244_v1  ;;  %v1322_v4 = vld [vmem:[%s1558_s27 + $0x14] sm:$0xf0] }
  0x39   : > { %v1171_v6 = vor.u32 %v1322_v4, %v1170_v3 }
  0x3b   : > { %839 = vmatpush.bf16.msrb.mxu0 %v1207_v14  ;;  %v1162_v14 = vld [vmem:[%s1558_s27] sm:$0xf] }
  0x3c   : > { %853 = vmatpush.bf16.msrb.mxu2 %v1271_v15 }
  0xaa   : > { %v507_v25 = vpop.f32.mrf.mxu1 }
  0xaf   : > { %v493_v24 = vpop.f32.mrf.mxu0  ;;  %v535_v27 = vpop.f32.mrf.mxu3 }
  0xb0   : > { %v508_v26 = vadd.f32 %v507_v25, %v493_v24 }
  0xb2   : > { %v1542_v29 = vmul.f32 10.0, %v508_v26  ;;  %v509_v34 = vpop.f32.mrf.mxu1 }
  0xb6   : > { %v521_v28 = vpop.f32.mrf.mxu2 }
  0xb7   : > { %v536_v30 = vadd.f32 %v535_v27, %v521_v28  ;;  %v495_v32 = vpop.f32.mrf.mxu0  ;;  %v537_v36 = vpop.f32.mrf.mxu3  ;;  %v1194_v27 = vld [vmem:[%s1558_s27 + $0x40] sm:$0xf]  ;;  %v1328_v28 = vld [vmem:[%s1558_s27 + $0x44] sm:$0xf0] }
  0xb8   : > { %v510_v35 = vadd.f32 %v509_v34, %v495_v32  ;;  %v1195_v32 = vor.u32 %v1328_v28, %v1194_v27  ;;  %v1327_v34 = vld [vmem:[%s1558_s27 + $0x44] sm:$0xf]  ;;  %v1228_v27 = vld [vmem:[%s1558_s27 + $0x88] sm:$0xf0] }
  0xb9   : > { %v1544_v31 = vmul.f32 10.0, %v536_v30  ;;  %v1258_v30 = vld [vmem:[%s1558_s27 + $0xc0] sm:$0xf] }
  0xba   : > { %v1548_v38 = vmul.f32 10.0, %v510_v35  ;;  %v1196_v35 = vld [vmem:[%s1558_s27 + $0x48] sm:$0xf0]  ;;  %812 = vmatpush.bf16.msrb.mxu1 %v1195_v32 }
  0xbb   : > { %v546_v33 = vmax.f32 %v1542_v29, %v1544_v31 }
  0xbd   : > { %547 = vmax.xlane.f32.xlu0 %v546_v33  ;;  %v1344_v33 = vld [vmem:[%s1558_s27 + $0xc4] sm:$0xf0] }
  0xbe   : > { %v523_v0 = vpop.f32.mrf.mxu2  ;;  %813 = vmatpush.bf16.msrb.mxu1 %v1187_v45 }
  0xbf   : > { %v538_v37 = vadd.f32 %v537_v36, %v523_v0  ;;  %v1259_v36 = vor.u32 %v1344_v33, %v1258_v30  ;;  %v1199_v0 = vor.u32 %v1327_v34, %v1196_v35 }
  0xc1   : > { %v1550_v39 = vmul.f32 10.0, %v538_v37  ;;  %v1343_v37 = vld [vmem:[%s1558_s27 + $0xc4] sm:$0xf]  ;;  %826 = vmatpush.bf16.msrb.mxu3 %v1259_v36  ;;  %840 = vmatpush.bf16.msrb.mxu0 %v1199_v0 }
  0xc2   : > { %814 = vmatpush.bf16.msrb.mxu1 %v1179_v57 }
  0xc3   : > { %v549_v40 = vmax.f32 %v1548_v38, %v1550_v39 }
  0xc5   : > { %550 = vmax.xlane.f32.xlu0 %v549_v40  ;;  %v1260_v40 = vld [vmem:[%s1558_s27 + $0xc8] sm:$0xf0]  ;;  %827 = vmatpush.bf16.msrb.mxu3 %v1251_v49 }
  0xc6   : > { %v1263_v41 = vor.u32 %v1343_v37, %v1260_v40  ;;  %841 = vmatpush.bf16.msrb.mxu0 %v1191_v50  ;;  %815 = vmatpush.bf16.msrb.mxu1 %v1171_v6  ;;  %v583_v50 = vld [vmem:[#allocation3 + $0x8] sm:$0xff] }
  0xc8   : > { %854 = vmatpush.bf16.msrb.mxu2 %v1263_v41 }
  0xc9   : > { %828 = vmatpush.bf16.msrb.mxu3 %v1243_v61 }
  0xca   : > { %842 = vmatpush.bf16.msrb.mxu0 %v1183_v62 }
  0xcc   : > { %855 = vmatpush.bf16.msrb.mxu2 %v1255_v53 }
  0xcd   : > { %829 = vmatpush.bf16.msrb.mxu3 %v1235_v10 }
  0xce   : > { %843 = vmatpush.bf16.msrb.mxu0 %v1175_v11 }
  0xd0   : > { %856 = vmatpush.bf16.msrb.mxu2 %v1247_v2 }
 0x130   : > { %v548_v16 = vpop.xlane.xlu0 %547 }
 0x131   : > { %v552_v17 = vmax.f32 %v544_v12, %v548_v16  ;;  %v1320_v16 = vld [vmem:[%s1558_s27 + $0x4] sm:$0xf0] }
 0x133   : > { %v554_v18 = vsub.f32 %v544_v12, %v552_v17  ;;  %873 = vst.msk [vmem:[#allocation2] sm:$0xff] %vm302_vm2, %v552_v17  ;;  %562 = vperm.xlu1 %1379, %v552_v17   ;;  %v1337_v12 = vld [vmem:[%s1558_s27 + $0x94] sm:$0xf]  ;;  %v1226_v17 = vld [vmem:[%s1558_s27 + $0x80] sm:$0xf] }
 0x134   : > { %v1239_v15 = vor.u32 %v1337_v12, %v1236_v13 }
 0x135   : > { %v556_v19 = vmul.f32 1.442695, %v554_v18  ;;  %v1336_v18 = vld [vmem:[%s1558_s27 + $0x84] sm:$0xf0] }
 0x136   : > { %857 = vmatpush.bf16.msrb.mxu2 %v1239_v15 }
 0x137   : > { %1382 = vpow2.f32 %v556_v19  ;;  %v1163_v19 = vor.u32 %v1320_v16, %v1162_v14 }
 0x138   : > { %v551_v21 = vpop.xlane.xlu0 %550 }
 0x139   : > { %v553_v22 = vmax.f32 %v545_v20, %v551_v21  ;;  %v1319_v21 = vld [vmem:[%s1558_s27 + $0x4] sm:$0xf]  ;;  %816 = vmatpush.bf16.msrb.mxu1 %v1163_v19 }
 0x13b   : > { %v555_v23 = vsub.f32 %v545_v20, %v553_v22  ;;  %874 = vst.msk [vmem:[#allocation2 + $0x8] sm:$0xff] %vm302_vm2, %v553_v22  ;;  %567 = vperm.xlu1 %1379, %v553_v22   ;;  %v1227_v20 = vor.u32 %v1336_v18, %v1226_v17  ;;  %v1164_v22 = vld [vmem:[%s1558_s27 + $0x8] sm:$0xf0] }
 0x13d   : > { %v1586_v24 = vpop.eup %1382  ;;  %v558_v25 = vmul.f32 1.442695, %v555_v23  ;;  %v1335_v23 = vld [vmem:[%s1558_s27 + $0x84] sm:$0xf]  ;;  %830 = vmatpush.bf16.msrb.mxu3 %v1227_v20 }
 0x13e   : > { %603 = vperm.xlu0 %1380, %v1586_v24   ;;  %v1231_v28 = vor.u32 %v1335_v23, %v1228_v27 }
 0x13f   : > { %1384 = vpow2.f32 %v558_v25  ;;  %v1167_v25 = vor.u32 %v1319_v21, %v1164_v22 }
 0x140   : > { %858 = vmatpush.bf16.msrb.mxu2 %v1231_v28 }
 0x141   : > { %844 = vmatpush.bf16.msrb.mxu0 %v1167_v25 }
 0x145   : > { %v1589_v26 = vpop.eup %1384 }
 0x146   : > { %608 = vperm.xlu1 %1379, %v1589_v26   ;;  %v585_v51 = vmul.f32 %v1589_v26, %v583_v50 }
 0x1a5   : > { %v563_v30 = vpop.permute.xlu1 %562 }
 0x1a6   : > { %v570_v32 = vsub.f32 %v1542_v29, %v563_v30  ;;  %v571_v33 = vsub.f32 %v1544_v31, %v563_v30 }
 0x1a8   : > { %v574_v34 = vmul.f32 1.442695, %v570_v32  ;;  %v576_v35 = vmul.f32 1.442695, %v571_v33 }
 0x1aa   : > { %1386 = vpow2.f32 %v574_v34 }
 0x1ab   : > { %1388 = vpow2.f32 %v576_v35 }
 0x1ad   : > { %v568_v36 = vpop.permute.xlu1 %567 }
 0x1ae   : > { %v572_v0 = vsub.f32 %v1548_v38, %v568_v36  ;;  %v573_v37 = vsub.f32 %v1550_v39, %v568_v36  ;;  %v582_v38 = vld [vmem:[#allocation3] sm:$0xff] }
 0x1af   : > { %v584_v39 = vmul.f32 %v1586_v24, %v582_v38  ;;  %v598_v24 = vld [vmem:[#allocation4 + $0x8] sm:$0xff] }
 0x1b0   : > { %v1387_v40 = vpop.eup %1386  ;;  %v578_v41 = vmul.f32 1.442695, %v572_v0  ;;  %v580_v42 = vmul.f32 1.442695, %v573_v37  ;;  %v604_v59 = vpop.permute.xlu0 %603 }
 0x1b1   : > { %v1389_v43 = vpop.eup %1388  ;;  %v611_v62 = vmul.f32 0.0, %v604_v59  ;;  %v612_v63 = vmul.f32 %v604_v59, %v598_v24 }
 0x1b2   : > { %1390 = vpow2.f32 %v578_v41  ;;  %v586_v44 = vadd.f32 %v1389_v43, %v1387_v40 }
 0x1b3   : > { %1392 = vpow2.f32 %v580_v42 }
 0x1b4   : > { %587 = vadd.xlane.f32.xlu2 %v586_v44 }
 0x1b8   : > { %v1391_v29 = vpop.eup %1390  ;;  %v609_v6 = vpop.permute.xlu1 %608 }
 0x1b9   : > { %v1393_v45 = vpop.eup %1392  ;;  %v615_v31 = vpack.c.bf16 %v1391_v29, %v1387_v40  ;;  %v613_v11 = vmul.f32 0.0, %v609_v6  ;;  %v614_v12 = vmul.f32 %v609_v6, %v600_v5 }
 0x1ba   : > { %v616_v46 = vpack.c.bf16 %v1393_v45, %v1389_v43  ;;  %v589_v47 = vadd.f32 %v1393_v45, %v1391_v29 }
 0x1bb   : > { %817 = vmatmul.bf16.vlgmr.msrb.gmra.mxu1 %v615_v31  ;;  %845 = vmatmul.bf16.vlgmr.msrb.gmra.mxu0 %v615_v31 }
 0x1bc   : > { %831 = vmatmul.bf16.vlgmr.msrb.gmra.mxu3 %v616_v46  ;;  %859 = vmatmul.bf16.vlgmr.msrb.gmra.mxu2 %v616_v46 }
 0x1bd   : > { %590 = vadd.xlane.f32.xlu2 %v589_v47 }
 0x227   : > { %v588_v48 = vpop.xlane.xlu2 %587 }
 0x228   : > { %v592_v49 = vadd.f32 %v588_v48, %v584_v39 }
 0x22a   : > { %595 = vst.msk [vmem:[#allocation3] sm:$0xff] %vm302_vm2, %v592_v49 }
 0x230   : > { %v591_v52 = vpop.xlane.xlu2 %590 }
 0x231   : > { %v593_v53 = vadd.f32 %v591_v52, %v585_v51  ;;  %v882_v54 = vld [vmem:[#allocation3] sm:$0xff] }
 0x232   : > { %1394 = vrcp.f32 %v882_v54 }
 0x233   : > { %596 = vst.msk [vmem:[#allocation3 + $0x8] sm:$0xff] %vm302_vm2, %v593_v53 }
 0x238   : > { %v1395_v55 = vpop.eup %1394  ;;  %v818_v57 = vpop.f32.mrf.mxu1 }
 0x239   : > { %888 = vperm.xlu2 %1381, %v1395_v55   ;;  %v846_v58 = vpop.f32.mrf.mxu0 }
 0x23a   : > { %v883_v56 = vld [vmem:[#allocation3 + $0x8] sm:$0xff] }
 0x23b   : > { %1396 = vrcp.f32 %v883_v56 }
 0x23f   : > { %v832_v60 = vpop.f32.mrf.mxu3  ;;  %v860_v61 = vpop.f32.mrf.mxu2 }
 0x240   : > { %v833_v1 = vadd.f32 %v832_v60, %v818_v57  ;;  %v861_v26 = vadd.f32 %v860_v61, %v846_v58  ;;  %v820_v7 = vpop.f32.mrf.mxu1 }
 0x241   : > { %v1397_v2 = vpop.eup %1396  ;;  %v848_v8 = vpop.f32.mrf.mxu0 }
 0x242   : > { %v865_v3 = vadd.f32 %v833_v1, %v611_v62  ;;  %v866_v4 = vadd.f32 %v861_v26, %v612_v63  ;;  %893 = vperm.xlu1 %1379, %v1397_v2  }
 0x244   : > { %870 = vst.msk [vmem:[#allocation4 + $0x8] sm:$0xff] %vm308_vm0, %v866_v4 }
 0x247   : > { %v834_v9 = vpop.f32.mrf.mxu3  ;;  %v862_v10 = vpop.f32.mrf.mxu2 }
 0x248   : > { %v835_v13 = vadd.f32 %v834_v9, %v820_v7  ;;  %v863_v14 = vadd.f32 %v862_v10, %v848_v8 }
 0x24a   : > { %v867_v15 = vadd.f32 %v835_v13, %v613_v11  ;;  %v868_v16 = vadd.f32 %v863_v14, %v614_v12 }
 0x24b   : > { %v879_v18 = vld [vmem:[#allocation4 + $0x8] sm:$0xff] }
 0x24c   : > { %872 = vst.msk [vmem:[#allocation4 + $0x18] sm:$0xff] %vm308_vm0, %v868_v16 }
 0x253   : > { %v881_v21 = vld [vmem:[#allocation4 + $0x18] sm:$0xff] }
 0x293   : > { %v889_v17 = vpop.permute.xlu2 %888 }
 0x294   : > { %v896_v19 = vmul.f32 %v889_v17, %v865_v3  ;;  %v897_v20 = vmul.f32 %v889_v17, %v879_v18 }
 0x296   : > { %900 = vst [vmem:[%s295_s4] sm:$0xff] %v896_v19 }
 0x297   : > { %901 = vst.msk [vmem:[%s295_s4 + $0x8] sm:$0xff] %vm308_vm0, %v897_v20 }
 0x2b4   : > { %v894_v22 = vpop.permute.xlu1 %893 }
 0x2b5   : > { %v898_v23 = vmul.f32 %v894_v22, %v867_v15  ;;  %v899_v25 = vmul.f32 %v894_v22, %v881_v21 }
 0x2b7   : > { %902 = vst [vmem:[%s295_s4 + $0x10] sm:$0xff] %v898_v23 }
 0x2b8   : > { %903 = vst.msk [vmem:[%s295_s4 + $0x18] sm:$0xff] %vm308_vm0, %v899_v25 }
 0x2b9 PF: > { %s13_s14 = sadd.s32 1, %s1420_s14   ;;  %s1661_s12 = smov %s1416_s13 }
 0x2ba   : > { %p10_p5 = scmp.ge.s32.totalorder %s13_s14, 4   ;;  %s1662_s13 = smov %s1664_s15 }
 0x2bc   :  { %12 = sbr.rel (!%p10_p5) target bundleno = 2 (0x2), region = 76 }

// kernel: contextual_attention_forward.5
= control target key start
LH: loop header
LB: loop body
LE: loop exit
PB: predicated region body
PF: predicated region fallthrough
CT: control target
= control target key end

     0   :  { %v1212_v0 = vmov 0   ;;  %vm730_vm0 = vcmask 1043456   ;;  %vm537_vm1 = vcmask 31744   ;;  %s2180_s1 = inlined_call_operand.vmem [shape: f32[512,1], index: 1, kind: input, shape index: {}]   ;;  %s2181_s3 = inlined_call_operand.vmem [shape: f32[4,128], index: 3, kind: input, shape index: {}]   ;;  %s2182_s0 = inlined_call_operand.vmem [shape: f32[512,4], index: 0, kind: input, shape index: {}]   ;;  %s2183_s4 = inlined_call_operand.vmem [shape: f32[1,128], index: 4, kind: input, shape index: {}]   ;;  %s2184_s2 = inlined_call_operand.vmem [shape: f32[512,128], index: 2, kind: input, shape index: {}]   ;;  %s2185_s5 = inlined_call_operand.vmem [shape: f32[512,128], index: 5, kind: output, shape index: {}]  }
   0x1   :  { %1210 = vset.pattern.permute.xlu2 %v1212_v0  ;;  %1209 = vset.pattern.permute.xlu1 %v1212_v0  ;;  %v88_v1 = vld [vmem:[%s2180_s1 + $0x20] sm:$0xff]  ;;  %v86_v2 = vld [vmem:[%s2180_s1 + $0x10] sm:$0xff]  ;;  %v89_v4 = vld [vmem:[%s2180_s1 + $0x28] sm:$0xff] }
   0x2   :  { %v84_v3 = vld [vmem:[%s2180_s1] sm:$0xff]  ;;  %1208 = vset.pattern.permute.xlu0 %v1212_v0  ;;  %170 = vperm.xlu2 %1210, %v88_v1   ;;  %v87_v5 = vld [vmem:[%s2180_s1 + $0x18] sm:$0xff]  ;;  %v85_v6 = vld [vmem:[%s2180_s1 + $0x8] sm:$0xff] }
   0x3   :  { %160 = vperm.xlu1 %1209, %v86_v2   ;;  %150 = vperm.xlu0 %1208, %v84_v3   ;;  %v92_v7 = vld [vmem:[%s2180_s1 + $0x40] sm:$0xff]  ;;  %v91_v8 = vld [vmem:[%s2180_s1 + $0x38] sm:$0xff]  ;;  %v90_v9 = vld [vmem:[%s2180_s1 + $0x30] sm:$0xff] }
   0x4   :  { %v95_v10 = vld [vmem:[%s2180_s1 + $0x58] sm:$0xff]  ;;  %v94_v11 = vld [vmem:[%s2180_s1 + $0x50] sm:$0xff]  ;;  %v93_v12 = vld [vmem:[%s2180_s1 + $0x48] sm:$0xff] }
   0x5   :  { %v98_v13 = vld [vmem:[%s2180_s1 + $0x70] sm:$0xff]  ;;  %v97_v14 = vld [vmem:[%s2180_s1 + $0x68] sm:$0xff]  ;;  %v96_v15 = vld [vmem:[%s2180_s1 + $0x60] sm:$0xff] }
   0x6   :  { %v100_v16 = vld [vmem:[%s2180_s1 + $0x80] sm:$0xff]  ;;  %v101_v19 = vld [vmem:[%s2180_s1 + $0x88] sm:$0xff]  ;;  %v102_v22 = vld [vmem:[%s2180_s1 + $0x90] sm:$0xff] }
   0x7   :  { %v132_v17 = vld [vmem:[%s2180_s1 + $0x180] sm:$0xff]  ;;  %v133_v20 = vld [vmem:[%s2180_s1 + $0x188] sm:$0xff]  ;;  %v134_v23 = vld [vmem:[%s2180_s1 + $0x190] sm:$0xff] }
   0x8   :  { %v116_v18 = vld [vmem:[%s2180_s1 + $0x100] sm:$0xff]  ;;  %v117_v21 = vld [vmem:[%s2180_s1 + $0x108] sm:$0xff]  ;;  %v118_v24 = vld [vmem:[%s2180_s1 + $0x110] sm:$0xff] }
   0x9   :  { %v103_v25 = vld [vmem:[%s2180_s1 + $0x98] sm:$0xff]  ;;  %v104_v28 = vld [vmem:[%s2180_s1 + $0xa0] sm:$0xff]  ;;  %v105_v31 = vld [vmem:[%s2180_s1 + $0xa8] sm:$0xff] }
   0xa   :  { %175 = vperm.xlu2 %1210, %v89_v4   ;;  %v135_v26 = vld [vmem:[%s2180_s1 + $0x198] sm:$0xff]  ;;  %v136_v29 = vld [vmem:[%s2180_s1 + $0x1a0] sm:$0xff]  ;;  %v137_v32 = vld [vmem:[%s2180_s1 + $0x1a8] sm:$0xff] }
   0xb   :  { %165 = vperm.xlu1 %1209, %v87_v5   ;;  %155 = vperm.xlu0 %1208, %v85_v6   ;;  %v119_v27 = vld [vmem:[%s2180_s1 + $0x118] sm:$0xff]  ;;  %v120_v30 = vld [vmem:[%s2180_s1 + $0x120] sm:$0xff]  ;;  %v121_v33 = vld [vmem:[%s2180_s1 + $0x128] sm:$0xff] }
   0xc   :  { %v532_v34 = vld [vmem:[%s2181_s3] sm:$0xf]  ;;  %v106_v35 = vld [vmem:[%s2180_s1 + $0xb0] sm:$0xff]  ;;  %v107_v39 = vld [vmem:[%s2180_s1 + $0xb8] sm:$0xff] }
   0xd   :  { %1139 = vmatpush.msk.msra.mxu0 %vm730_vm0, %v532_v34  ;;  %1204 = vmatpush.msk.msra.mxu1 %vm730_vm0, %v532_v34  ;;  %v138_v36 = vld [vmem:[%s2180_s1 + $0x1b0] sm:$0xff]  ;;  %v139_v40 = vld [vmem:[%s2180_s1 + $0x1b8] sm:$0xff]  ;;  %v108_v43 = vld [vmem:[%s2180_s1 + $0xc0] sm:$0xff] }
   0xe   :  { %v122_v37 = vld [vmem:[%s2180_s1 + $0x130] sm:$0xff]  ;;  %1205 = vmatpush.msk.msra.mxu2 %vm730_vm0, %v532_v34  ;;  %1206 = vmatpush.msk.msra.mxu3 %vm730_vm0, %v532_v34  ;;  %v123_v41 = vld [vmem:[%s2180_s1 + $0x138] sm:$0xff]  ;;  %v140_v44 = vld [vmem:[%s2180_s1 + $0x1c0] sm:$0xff] }
   0xf   :  { %v124_v45 = vld [vmem:[%s2180_s1 + $0x140] sm:$0xff]  ;;  %v109_v47 = vld [vmem:[%s2180_s1 + $0xc8] sm:$0xff]  ;;  %v110_v55 = vld [vmem:[%s2180_s1 + $0xd0] sm:$0xff] }
  0x10   :  { %v141_v48 = vld [vmem:[%s2180_s1 + $0x1c8] sm:$0xff]  ;;  %v20_v50 = vld [vmem:[%s2182_s0] sm:$0xff]  ;;  %v142_v56 = vld [vmem:[%s2180_s1 + $0x1d0] sm:$0xff] }
  0x11   :  { %v125_v49 = vld [vmem:[%s2180_s1 + $0x148] sm:$0xff]  ;;  %v126_v57 = vld [vmem:[%s2180_s1 + $0x150] sm:$0xff]  ;;  %v111_v63 = vld [vmem:[%s2180_s1 + $0xd8] sm:$0xff] }
  0x12   :  { %190 = vperm.xlu2 %1210, %v92_v7   ;;  %v21_v58 = vld [vmem:[%s2182_s0 + $0x8] sm:$0xff]  ;;  %v143_v0 = vld [vmem:[%s2180_s1 + $0x1d8] sm:$0xff]  ;;  %v36_v2 = vld [vmem:[%s2182_s0 + $0x80] sm:$0xff] }
  0x13   :  { %185 = vperm.xlu1 %1209, %v91_v8   ;;  %180 = vperm.xlu0 %1208, %v90_v9   ;;  %v127_v1 = vld [vmem:[%s2180_s1 + $0x158] sm:$0xff]  ;;  %v22_v3 = vld [vmem:[%s2182_s0 + $0x10] sm:$0xff]  ;;  %v112_v9 = vld [vmem:[%s2180_s1 + $0xe0] sm:$0xff] }
  0x14   :  { %v68_v34 = vld [vmem:[%s2182_s0 + $0x180] sm:$0xff] }
  0x1a   :  { %205 = vperm.xlu2 %1210, %v95_v10   ;;  %v144_v10 = vld [vmem:[%s2180_s1 + $0x1e0] sm:$0xff] }
  0x1b   :  { %200 = vperm.xlu1 %1209, %v94_v11   ;;  %195 = vperm.xlu0 %1208, %v93_v12   ;;  %v128_v11 = vld [vmem:[%s2180_s1 + $0x160] sm:$0xff]  ;;  %v37_v12 = vld [vmem:[%s2182_s0 + $0x88] sm:$0xff] }
  0x22   :  { %220 = vperm.xlu2 %1210, %v98_v13   ;;  %v23_v13 = vld [vmem:[%s2182_s0 + $0x18] sm:$0xff] }
  0x23   :  { %215 = vperm.xlu1 %1209, %v97_v14   ;;  %210 = vperm.xlu0 %1208, %v96_v15  }
  0x2a   :  { %230 = vperm.xlu2 %1210, %v100_v16  }
  0x2b   :  { %390 = vperm.xlu1 %1209, %v132_v17   ;;  %310 = vperm.xlu0 %1208, %v116_v18  }
  0x32   :  { %235 = vperm.xlu2 %1210, %v101_v19   ;;  %v113_v19 = vld [vmem:[%s2180_s1 + $0xe8] sm:$0xff] }
  0x33   :  { %395 = vperm.xlu1 %1209, %v133_v20   ;;  %315 = vperm.xlu0 %1208, %v117_v21   ;;  %v145_v20 = vld [vmem:[%s2180_s1 + $0x1e8] sm:$0xff] }
  0x34   :  { %v129_v21 = vld [vmem:[%s2180_s1 + $0x168] sm:$0xff] }
  0x3a   :  { %240 = vperm.xlu2 %1210, %v102_v22   ;;  %v38_v22 = vld [vmem:[%s2182_s0 + $0x90] sm:$0xff] }
  0x3b   :  { %400 = vperm.xlu1 %1209, %v134_v23   ;;  %320 = vperm.xlu0 %1208, %v118_v24   ;;  %v24_v23 = vld [vmem:[%s2182_s0 + $0x20] sm:$0xff] }
  0x42   :  { %245 = vperm.xlu2 %1210, %v103_v25  }
  0x43   :  { %405 = vperm.xlu1 %1209, %v135_v26   ;;  %325 = vperm.xlu0 %1208, %v119_v27  }
  0x4a   :  { %250 = vperm.xlu2 %1210, %v104_v28  }
  0x4b   :  { %410 = vperm.xlu1 %1209, %v136_v29   ;;  %330 = vperm.xlu0 %1208, %v120_v30   ;;  %v114_v29 = vld [vmem:[%s2180_s1 + $0xf0] sm:$0xff] }
  0x4c   :  { %v146_v30 = vld [vmem:[%s2180_s1 + $0x1f0] sm:$0xff] }
  0x52   :  { %255 = vperm.xlu2 %1210, %v105_v31   ;;  %v130_v31 = vld [vmem:[%s2180_s1 + $0x170] sm:$0xff] }
  0x53   :  { %415 = vperm.xlu1 %1209, %v137_v32   ;;  %335 = vperm.xlu0 %1208, %v121_v33   ;;  %v39_v32 = vld [vmem:[%s2182_s0 + $0x98] sm:$0xff]  ;;  %v25_v33 = vld [vmem:[%s2182_s0 + $0x28] sm:$0xff] }
  0x5a   :  { %260 = vperm.xlu2 %1210, %v106_v35   ;;  %v52_v35 = vld [vmem:[%s2182_s0 + $0x100] sm:$0xff] }
  0x5b   :  { %420 = vperm.xlu1 %1209, %v138_v36   ;;  %340 = vperm.xlu0 %1208, %v122_v37  }
  0x5c   :  { %v1354_v38 = vpop.permute.xlu2 %170 }
  0x5d   :  { %v472_v28 = vmul.f32 %v1354_v38, %v24_v23  ;;  %v56_v23 = vld [vmem:[%s2182_s0 + $0x120] sm:$0xff] }
  0x62   :  { %265 = vperm.xlu2 %1210, %v107_v39  }
  0x63   :  { %425 = vperm.xlu1 %1209, %v139_v40   ;;  %345 = vperm.xlu0 %1208, %v123_v41  }
  0x64   :  { %v1365_v42 = vpop.permute.xlu2 %175 }
  0x65   :  { %v473_v40 = vmul.f32 %v1365_v42, %v25_v33  ;;  %v131_v42 = vld [vmem:[%s2180_s1 + $0x178] sm:$0xff]  ;;  %v44_v33 = vld [vmem:[%s2182_s0 + $0xc0] sm:$0xff] }
  0x6a   :  { %270 = vperm.xlu2 %1210, %v108_v43  }
  0x6b   :  { %430 = vperm.xlu1 %1209, %v140_v44   ;;  %350 = vperm.xlu0 %1208, %v124_v45   ;;  %v99_v44 = vld [vmem:[%s2180_s1 + $0x78] sm:$0xff] }
  0x6c   :  { %v1376_v46 = vpop.permute.xlu2 %190  ;;  %v147_v45 = vld [vmem:[%s2180_s1 + $0x1f8] sm:$0xff] }
  0x72   :  { %275 = vperm.xlu2 %1210, %v109_v47   ;;  %v40_v47 = vld [vmem:[%s2182_s0 + $0xa0] sm:$0xff] }
  0x73   :  { %435 = vperm.xlu1 %1209, %v141_v48   ;;  %355 = vperm.xlu0 %1208, %v125_v49   ;;  %v26_v48 = vld [vmem:[%s2182_s0 + $0x30] sm:$0xff]  ;;  %v69_v49 = vld [vmem:[%s2182_s0 + $0x188] sm:$0xff] }
  0x74   :  { %v1390_v51 = vpop.permute.xlu2 %205 }
  0x75   :  { %v161_v52 = vpop.permute.xlu1 %160  ;;  %v151_v53 = vpop.permute.xlu0 %150 }
  0x76   :  { %v468_v54 = vmul.f32 %v151_v53, %v20_v50  ;;  %v470_v8 = vmul.f32 %v161_v52, %v22_v3  ;;  %v53_v50 = vld [vmem:[%s2182_s0 + $0x108] sm:$0xff] }
  0x78   :  { %1140 = vmatmul.msk.f32.vlgmr.msra.gmra.mxu0 %vm537_vm1, %v468_v54 }
  0x7a   :  { %280 = vperm.xlu2 %1210, %v110_v55  }
  0x7b   :  { %440 = vperm.xlu1 %1209, %v142_v56   ;;  %360 = vperm.xlu0 %1208, %v126_v57  }
  0x7c   :  { %v1405_v59 = vpop.permute.xlu2 %220 }
  0x7d   :  { %v166_v60 = vpop.permute.xlu1 %165  ;;  %v156_v61 = vpop.permute.xlu0 %155 }
  0x7e   :  { %v469_v62 = vmul.f32 %v156_v61, %v21_v58  ;;  %v471_v18 = vmul.f32 %v166_v60, %v23_v13  ;;  %v115_v60 = vld [vmem:[%s2180_s1 + $0xf8] sm:$0xff]  ;;  %v41_v61 = vld [vmem:[%s2182_s0 + $0xa8] sm:$0xff] }
  0x80   :  { %1141 = vmatmul.msk.f32.gmra.mxu0 %vm537_vm1, %v469_v62  ;;  %v27_v62 = vld [vmem:[%s2182_s0 + $0x38] sm:$0xff] }
  0x82   :  { %285 = vperm.xlu2 %1210, %v111_v63   ;;  %v70_v63 = vld [vmem:[%s2182_s0 + $0x190] sm:$0xff] }
  0x83   :  { %445 = vperm.xlu1 %1209, %v143_v0   ;;  %365 = vperm.xlu0 %1208, %v127_v1   ;;  %v54_v0 = vld [vmem:[%s2182_s0 + $0x110] sm:$0xff] }
  0x84   :  { %v231_v4 = vpop.permute.xlu2 %230 }
  0x85   :  { %v484_v5 = vmul.f32 %v231_v4, %v36_v2  ;;  %v1423_v6 = vpop.permute.xlu1 %185  ;;  %v1425_v7 = vpop.permute.xlu0 %180 }
  0x86   :  { %v474_v56 = vmul.f32 %v1425_v7, %v26_v48 }
  0x87   :  { %1156 = vmatmul.msk.f32.vlgmr.msra.gmra.mxu1 %vm537_vm1, %v484_v5  ;;  %v475_v5 = vmul.f32 %v1423_v6, %v27_v62  ;;  %v71_v6 = vld [vmem:[%s2182_s0 + $0x198] sm:$0xff] }
  0x88   :  { %1142 = vmatmul.msk.f32.gmra.mxu0 %vm537_vm1, %v470_v8 }
  0x8a   :  { %290 = vperm.xlu2 %1210, %v112_v9   ;;  %v42_v9 = vld [vmem:[%s2182_s0 + $0xb0] sm:$0xff] }
  0x8b   :  { %450 = vperm.xlu1 %1209, %v144_v10   ;;  %370 = vperm.xlu0 %1208, %v128_v11   ;;  %v28_v10 = vld [vmem:[%s2182_s0 + $0x40] sm:$0xff]  ;;  %v55_v11 = vld [vmem:[%s2182_s0 + $0x118] sm:$0xff] }
  0x8c   :  { %v236_v14 = vpop.permute.xlu2 %235 }
  0x8d   :  { %v485_v15 = vmul.f32 %v236_v14, %v37_v12  ;;  %v1444_v16 = vpop.permute.xlu1 %200  ;;  %v1446_v17 = vpop.permute.xlu0 %195 }
  0x8f   :  { %1157 = vmatmul.msk.f32.gmra.mxu1 %vm537_vm1, %v485_v15 }
  0x90   :  { %1143 = vmatmul.msk.f32.gmra.mxu0 %vm537_vm1, %v471_v18  ;;  %v476_v18 = vmul.f32 %v1376_v46, %v28_v10  ;;  %v72_v46 = vld [vmem:[%s2182_s0 + $0x1a0] sm:$0xff] }
  0x92   :  { %295 = vperm.xlu2 %1210, %v113_v19  }
  0x93   :  { %455 = vperm.xlu1 %1209, %v145_v20   ;;  %375 = vperm.xlu0 %1208, %v129_v21   ;;  %v43_v21 = vld [vmem:[%s2182_s0 + $0xb8] sm:$0xff] }
  0x94   :  { %v241_v24 = vpop.permute.xlu2 %240 }
  0x95   :  { %v486_v25 = vmul.f32 %v241_v24, %v38_v22  ;;  %v1465_v26 = vpop.permute.xlu1 %215  ;;  %v1467_v27 = vpop.permute.xlu0 %210  ;;  %v29_v22 = vld [vmem:[%s2182_s0 + $0x48] sm:$0xff] }
  0x97   :  { %1158 = vmatmul.msk.f32.gmra.mxu1 %vm537_vm1, %v486_v25 }
  0x98   :  { %1144 = vmatmul.msk.f32.gmra.mxu0 %vm537_vm1, %v472_v28 }
  0x9a   :  { %300 = vperm.xlu2 %1210, %v114_v29  }
  0x9b   :  { %460 = vperm.xlu1 %1209, %v146_v30   ;;  %380 = vperm.xlu0 %1208, %v130_v31   ;;  %v477_v30 = vmul.f32 %v1446_v17, %v29_v22  ;;  %v73_v17 = vld [vmem:[%s2182_s0 + $0x1a8] sm:$0xff] }
  0x9c   :  { %v246_v36 = vpop.permute.xlu2 %245 }
  0x9d   :  { %v487_v37 = vmul.f32 %v246_v36, %v39_v32  ;;  %v391_v38 = vpop.permute.xlu1 %390  ;;  %v311_v39 = vpop.permute.xlu0 %310 }
  0x9e   :  { %v516_v41 = vmul.f32 %v391_v38, %v68_v34  ;;  %v500_v43 = vmul.f32 %v311_v39, %v52_v35  ;;  %v30_v34 = vld [vmem:[%s2182_s0 + $0x50] sm:$0xff]  ;;  %v57_v35 = vld [vmem:[%s2182_s0 + $0x128] sm:$0xff] }
  0x9f   :  { %1159 = vmatmul.msk.f32.gmra.mxu1 %vm537_vm1, %v487_v37 }
  0xa0   :  { %1145 = vmatmul.msk.f32.gmra.mxu0 %vm537_vm1, %v473_v40  ;;  %1172 = vmatmul.msk.f32.vlgmr.msra.gmra.mxu2 %vm537_vm1, %v500_v43  ;;  %v478_v40 = vmul.f32 %v1444_v16, %v30_v34  ;;  %v74_v16 = vld [vmem:[%s2182_s0 + $0x1b0] sm:$0xff]  ;;  %v79_v34 = vld [vmem:[%s2182_s0 + $0x1d8] sm:$0xff] }
  0xa1   :  { %1188 = vmatmul.msk.f32.vlgmr.msra.gmra.mxu3 %vm537_vm1, %v516_v41 }
  0xa2   :  { %225 = vperm.xlu2 %1210, %v99_v44   ;;  %v45_v44 = vld [vmem:[%s2182_s0 + $0xc8] sm:$0xff] }
  0xa3   :  { %465 = vperm.xlu1 %1209, %v147_v45   ;;  %385 = vperm.xlu0 %1208, %v131_v42   ;;  %v31_v45 = vld [vmem:[%s2182_s0 + $0x58] sm:$0xff]  ;;  %v58_v42 = vld [vmem:[%s2182_s0 + $0x130] sm:$0xff] }
  0xa4   :  { %v251_v52 = vpop.permute.xlu2 %250 }
  0xa5   :  { %v488_v53 = vmul.f32 %v251_v52, %v40_v47  ;;  %v396_v54 = vpop.permute.xlu1 %395  ;;  %v316_v55 = vpop.permute.xlu0 %315  ;;  %v479_v52 = vmul.f32 %v1390_v51, %v31_v45  ;;  %v75_v51 = vld [vmem:[%s2182_s0 + $0x1b8] sm:$0xff] }
  0xa6   :  { %v517_v57 = vmul.f32 %v396_v54, %v69_v49  ;;  %v501_v58 = vmul.f32 %v316_v55, %v53_v50  ;;  %v46_v55 = vld [vmem:[%s2182_s0 + $0xd0] sm:$0xff] }
  0xa7   :  { %1160 = vmatmul.msk.f32.gmra.mxu1 %vm537_vm1, %v488_v53 }
  0xa8   :  { %1146 = vmatmul.msk.f32.gmra.mxu0 %vm537_vm1, %v474_v56  ;;  %1173 = vmatmul.msk.f32.gmra.mxu2 %vm537_vm1, %v501_v58  ;;  %v32_v56 = vld [vmem:[%s2182_s0 + $0x60] sm:$0xff] }
  0xa9   :  { %1189 = vmatmul.msk.f32.gmra.mxu3 %vm537_vm1, %v517_v57  ;;  %v59_v57 = vld [vmem:[%s2182_s0 + $0x138] sm:$0xff] }
  0xab   :  { %305 = vperm.xlu0 %1208, %v115_v60  }
  0xac   :  { %v256_v1 = vpop.permute.xlu2 %255 }
  0xad   :  { %v489_v2 = vmul.f32 %v256_v1, %v41_v61  ;;  %v401_v3 = vpop.permute.xlu1 %400  ;;  %v321_v4 = vpop.permute.xlu0 %320 }
  0xae   :  { %v518_v7 = vmul.f32 %v401_v3, %v70_v63  ;;  %v502_v8 = vmul.f32 %v321_v4, %v54_v0  ;;  %v480_v63 = vmul.f32 %v1467_v27, %v32_v56  ;;  %v33_v3 = vld [vmem:[%s2182_s0 + $0x68] sm:$0xff]  ;;  %v76_v27 = vld [vmem:[%s2182_s0 + $0x1c0] sm:$0xff] }
  0xaf   :  { %1161 = vmatmul.msk.f32.gmra.mxu1 %vm537_vm1, %v489_v2  ;;  %v47_v2 = vld [vmem:[%s2182_s0 + $0xd8] sm:$0xff]  ;;  %v60_v4 = vld [vmem:[%s2182_s0 + $0x140] sm:$0xff]  ;;  %v481_v10 = vmul.f32 %v1465_v26, %v33_v3  ;;  %v77_v26 = vld [vmem:[%s2182_s0 + $0x1c8] sm:$0xff] }
  0xb0   :  { %1147 = vmatmul.msk.f32.gmra.mxu0 %vm537_vm1, %v475_v5  ;;  %1174 = vmatmul.msk.f32.gmra.mxu2 %vm537_vm1, %v502_v8 }
  0xb1   :  { %1190 = vmatmul.msk.f32.gmra.mxu3 %vm537_vm1, %v518_v7 }
  0xb4   :  { %v261_v12 = vpop.permute.xlu2 %260 }
  0xb5   :  { %v490_v13 = vmul.f32 %v261_v12, %v42_v9  ;;  %v406_v14 = vpop.permute.xlu1 %405  ;;  %v326_v15 = vpop.permute.xlu0 %325  ;;  %v48_v12 = vld [vmem:[%s2182_s0 + $0xe0] sm:$0xff] }
  0xb6   :  { %v519_v19 = vmul.f32 %v406_v14, %v71_v6  ;;  %v503_v20 = vmul.f32 %v326_v15, %v55_v11  ;;  %v61_v14 = vld [vmem:[%s2182_s0 + $0x148] sm:$0xff] }
  0xb7   :  { %1162 = vmatmul.msk.f32.gmra.mxu1 %vm537_vm1, %v490_v13  ;;  %v34_v13 = vld [vmem:[%s2182_s0 + $0x70] sm:$0xff] }
  0xb8   :  { %1148 = vmatmul.msk.f32.gmra.mxu0 %vm537_vm1, %v476_v18  ;;  %1175 = vmatmul.msk.f32.gmra.mxu2 %vm537_vm1, %v503_v20 }
  0xb9   :  { %1191 = vmatmul.msk.f32.gmra.mxu3 %vm537_vm1, %v519_v19 }
  0xbc   :  { %v266_v24 = vpop.permute.xlu2 %265 }
  0xbd   :  { %v491_v25 = vmul.f32 %v266_v24, %v43_v21  ;;  %v411_v28 = vpop.permute.xlu1 %410  ;;  %v331_v29 = vpop.permute.xlu0 %330  ;;  %v482_v21 = vmul.f32 %v1405_v59, %v34_v13  ;;  %v78_v24 = vld [vmem:[%s2182_s0 + $0x1d0] sm:$0xff] }
  0xbe   :  { %v520_v31 = vmul.f32 %v411_v28, %v72_v46  ;;  %v504_v32 = vmul.f32 %v331_v29, %v56_v23  ;;  %v49_v23 = vld [vmem:[%s2182_s0 + $0xe8] sm:$0xff]  ;;  %v62_v59 = vld [vmem:[%s2182_s0 + $0x150] sm:$0xff] }
  0xbf   :  { %1163 = vmatmul.msk.f32.gmra.mxu1 %vm537_vm1, %v491_v25 }
  0xc0   :  { %1149 = vmatmul.msk.f32.gmra.mxu0 %vm537_vm1, %v477_v30  ;;  %1176 = vmatmul.msk.f32.gmra.mxu2 %vm537_vm1, %v504_v32 }
  0xc1   :  { %1192 = vmatmul.msk.f32.gmra.mxu3 %vm537_vm1, %v520_v31 }
  0xc4   :  { %v271_v36 = vpop.permute.xlu2 %270 }
  0xc5   :  { %v492_v37 = vmul.f32 %v271_v36, %v44_v33  ;;  %v416_v38 = vpop.permute.xlu1 %415  ;;  %v336_v39 = vpop.permute.xlu0 %335  ;;  %v50_v33 = vld [vmem:[%s2182_s0 + $0xf0] sm:$0xff] }
  0xc6   :  { %v521_v41 = vmul.f32 %v416_v38, %v73_v17  ;;  %v505_v43 = vmul.f32 %v336_v39, %v57_v35  ;;  %v63_v17 = vld [vmem:[%s2182_s0 + $0x158] sm:$0xff]  ;;  %v1687_v35 = vld [vmem:[%s2183_s4] ss:$0 sm:$0xff] }
  0xc7   :  { %1164 = vmatmul.msk.f32.gmra.mxu1 %vm537_vm1, %v492_v37 }
  0xc8   :  { %1150 = vmatmul.msk.f32.gmra.mxu0 %vm537_vm1, %v478_v40  ;;  %1177 = vmatmul.msk.f32.gmra.mxu2 %vm537_vm1, %v505_v43 }
  0xc9   :  { %1193 = vmatmul.msk.f32.gmra.mxu3 %vm537_vm1, %v521_v41 }
  0xcc   :  { %v276_v47 = vpop.permute.xlu2 %275 }
  0xcd   :  { %v493_v48 = vmul.f32 %v276_v47, %v45_v44  ;;  %v421_v49 = vpop.permute.xlu1 %420  ;;  %v341_v50 = vpop.permute.xlu0 %340  ;;  %v943_v44 = vld [vmem:[%s2184_s2] sm:$0xff] }
  0xce   :  { %v522_v53 = vmul.f32 %v421_v49, %v74_v16  ;;  %v506_v54 = vmul.f32 %v341_v50, %v58_v42  ;;  %v35_v42 = vld [vmem:[%s2182_s0 + $0x78] sm:$0xff]  ;;  %v80_v47 = vld [vmem:[%s2182_s0 + $0x1e0] sm:$0xff] }
  0xcf   :  { %1165 = vmatmul.msk.f32.gmra.mxu1 %vm537_vm1, %v493_v48  ;;  %v64_v48 = vld [vmem:[%s2182_s0 + $0x160] sm:$0xff] }
  0xd0   :  { %1151 = vmatmul.msk.f32.gmra.mxu0 %vm537_vm1, %v479_v52  ;;  %1178 = vmatmul.msk.f32.gmra.mxu2 %vm537_vm1, %v506_v54 }
  0xd1   :  { %1194 = vmatmul.msk.f32.gmra.mxu3 %vm537_vm1, %v522_v53 }
  0xd4   :  { %v281_v58 = vpop.permute.xlu2 %280 }
  0xd5   :  { %v494_v60 = vmul.f32 %v281_v58, %v46_v55  ;;  %v426_v61 = vpop.permute.xlu1 %425  ;;  %v346_v62 = vpop.permute.xlu0 %345 }
  0xd6   :  { %v523_v0 = vmul.f32 %v426_v61, %v75_v51  ;;  %v507_v1 = vmul.f32 %v346_v62, %v59_v57  ;;  %v944_v51 = vld [vmem:[%s2184_s2 + $0x8] sm:$0xff] }
  0xd7   :  { %1166 = vmatmul.msk.f32.gmra.mxu1 %vm537_vm1, %v494_v60  ;;  %v81_v60 = vld [vmem:[%s2182_s0 + $0x1e8] sm:$0xff] }
  0xd8   :  { %1152 = vmatmul.msk.f32.gmra.mxu0 %vm537_vm1, %v480_v63  ;;  %1179 = vmatmul.msk.f32.gmra.mxu2 %vm537_vm1, %v507_v1  ;;  %v65_v61 = vld [vmem:[%s2182_s0 + $0x168] sm:$0xff]  ;;  %v959_v63 = vld [vmem:[%s2184_s2 + $0x80] sm:$0xff] }
  0xd9   :  { %1195 = vmatmul.msk.f32.gmra.mxu3 %vm537_vm1, %v523_v0 }
  0xdc   :  { %v286_v5 = vpop.permute.xlu2 %285 }
  0xdd   :  { %v495_v7 = vmul.f32 %v286_v5, %v47_v2  ;;  %v431_v8 = vpop.permute.xlu1 %430  ;;  %v351_v9 = vpop.permute.xlu0 %350  ;;  %v945_v5 = vld [vmem:[%s2184_s2 + $0x10] sm:$0xff] }
  0xde   :  { %v524_v6 = vmul.f32 %v431_v8, %v76_v27  ;;  %v508_v11 = vmul.f32 %v351_v9, %v60_v4 }
  0xdf   :  { %1167 = vmatmul.msk.f32.gmra.mxu1 %vm537_vm1, %v495_v7 }
  0xe0   :  { %1153 = vmatmul.msk.f32.gmra.mxu0 %vm537_vm1, %v481_v10  ;;  %1180 = vmatmul.msk.f32.gmra.mxu2 %vm537_vm1, %v508_v11  ;;  %v82_v10 = vld [vmem:[%s2182_s0 + $0x1f0] sm:$0xff] }
  0xe1   :  { %1196 = vmatmul.msk.f32.gmra.mxu3 %vm537_vm1, %v524_v6  ;;  %v66_v6 = vld [vmem:[%s2182_s0 + $0x170] sm:$0xff] }
  0xe4   :  { %v291_v15 = vpop.permute.xlu2 %290 }
  0xe5   :  { %v496_v18 = vmul.f32 %v291_v15, %v48_v12  ;;  %v436_v19 = vpop.permute.xlu1 %435  ;;  %v356_v20 = vpop.permute.xlu0 %355  ;;  %v960_v12 = vld [vmem:[%s2184_s2 + $0x88] sm:$0xff] }
  0xe6   :  { %v525_v22 = vmul.f32 %v436_v19, %v77_v26  ;;  %v509_v46 = vmul.f32 %v356_v20, %v61_v14  ;;  %v946_v20 = vld [vmem:[%s2184_s2 + $0x18] sm:$0xff] }
  0xe7   :  { %1168 = vmatmul.msk.f32.gmra.mxu1 %vm537_vm1, %v496_v18 }
  0xe8   :  { %1154 = vmatmul.msk.f32.gmra.mxu0 %vm537_vm1, %v482_v21  ;;  %1181 = vmatmul.msk.f32.gmra.mxu2 %vm537_vm1, %v509_v46 }
  0xe9   :  { %1197 = vmatmul.msk.f32.gmra.mxu3 %vm537_vm1, %v525_v22 }
  0xec   :  { %v296_v25 = vpop.permute.xlu2 %295 }
  0xed   :  { %v497_v28 = vmul.f32 %v296_v25, %v49_v23  ;;  %v441_v29 = vpop.permute.xlu1 %440  ;;  %v361_v30 = vpop.permute.xlu0 %360  ;;  %v83_v23 = vld [vmem:[%s2182_s0 + $0x1f8] sm:$0xff]  ;;  %v961_v25 = vld [vmem:[%s2184_s2 + $0x90] sm:$0xff] }
  0xee   :  { %v526_v31 = vmul.f32 %v441_v29, %v78_v24  ;;  %v510_v32 = vmul.f32 %v361_v30, %v62_v59  ;;  %v67_v24 = vld [vmem:[%s2182_s0 + $0x178] sm:$0xff] }
  0xef   :  { %1169 = vmatmul.msk.f32.gmra.mxu1 %vm537_vm1, %v497_v28 }
  0xf0   :  { %1182 = vmatmul.msk.f32.gmra.mxu2 %vm537_vm1, %v510_v32 }
  0xf1   :  { %1198 = vmatmul.msk.f32.gmra.mxu3 %vm537_vm1, %v526_v31 }
  0xf4   :  { %v301_v36 = vpop.permute.xlu2 %300 }
  0xf5   :  { %v498_v37 = vmul.f32 %v301_v36, %v50_v33  ;;  %v446_v38 = vpop.permute.xlu1 %445  ;;  %v366_v39 = vpop.permute.xlu0 %365 }
  0xf6   :  { %v527_v40 = vmul.f32 %v446_v38, %v79_v34  ;;  %v511_v41 = vmul.f32 %v366_v39, %v63_v17  ;;  %v751_v43 = vpop.f32.mrf.mxu0  ;;  %v947_v34 = vld [vmem:[%s2184_s2 + $0x20] sm:$0xff]  ;;  %v51_v38 = vld [vmem:[%s2182_s0 + $0xf8] sm:$0xff] }
  0xf7   :  { %v752_v45 = vadd.f32 %v1687_v35, %v751_v43  ;;  %1170 = vmatmul.msk.f32.gmra.mxu1 %vm537_vm1, %v498_v37 }
  0xf8   :  { %1183 = vmatmul.msk.f32.gmra.mxu2 %vm537_vm1, %v511_v41 }
  0xf9   :  { %v1007_v16 = vadd.f32 %v943_v44, %v752_v45  ;;  %1199 = vmatmul.msk.f32.gmra.mxu3 %vm537_vm1, %v527_v40  ;;  %v962_v40 = vld [vmem:[%s2184_s2 + $0x98] sm:$0xff] }
  0xfb   :  { %1071 = vst [vmem:[%s2185_s5] sm:$0xff] %v1007_v16  ;;  %v948_v16 = vld [vmem:[%s2184_s2 + $0x28] sm:$0xff] }
  0xfc   :  { %v226_v49 = vpop.permute.xlu2 %225 }
  0xfd   :  { %v483_v50 = vmul.f32 %v226_v49, %v35_v42  ;;  %v451_v52 = vpop.permute.xlu1 %450  ;;  %v371_v53 = vpop.permute.xlu0 %370 }
  0xfe   :  { %v528_v54 = vmul.f32 %v451_v52, %v80_v47  ;;  %v512_v55 = vmul.f32 %v371_v53, %v64_v48  ;;  %v754_v56 = vpop.f32.mrf.mxu0 }
  0xff   :  { %v755_v57 = vadd.f32 %v1687_v35, %v754_v56  ;;  %1155 = vmatmul.msk.f32.gmra.mxu0 %vm537_vm1, %v483_v50  ;;  %v975_v50 = vld [vmem:[%s2184_s2 + $0x100] sm:$0xff] }
 0x100   :  { %1184 = vmatmul.msk.f32.gmra.mxu2 %vm537_vm1, %v512_v55  ;;  %v963_v56 = vld [vmem:[%s2184_s2 + $0xa0] sm:$0xff] }
 0x101   :  { %v1008_v58 = vadd.f32 %v944_v51, %v755_v57  ;;  %1200 = vmatmul.msk.f32.gmra.mxu3 %vm537_vm1, %v528_v54  ;;  %v991_v54 = vld [vmem:[%s2184_s2 + $0x180] sm:$0xff] }
 0x103   :  { %1072 = vst [vmem:[%s2185_s5 + $0x8] sm:$0xff] %v1008_v58 }
 0x104   :  { %v799_v62 = vpop.f32.mrf.mxu1 }
 0x105   :  { %v456_v0 = vpop.permute.xlu1 %455  ;;  %v376_v1 = vpop.permute.xlu0 %375  ;;  %v800_v2 = vadd.f32 %v1687_v35, %v799_v62 }
 0x106   :  { %v529_v3 = vmul.f32 %v456_v0, %v81_v60  ;;  %v513_v27 = vmul.f32 %v376_v1, %v65_v61  ;;  %v757_v4 = vpop.f32.mrf.mxu0  ;;  %v949_v61 = vld [vmem:[%s2184_s2 + $0x30] sm:$0xff] }
 0x107   :  { %v758_v7 = vadd.f32 %v1687_v35, %v757_v4  ;;  %v1023_v8 = vadd.f32 %v959_v63, %v800_v2 }
 0x108   :  { %1185 = vmatmul.msk.f32.gmra.mxu2 %vm537_vm1, %v513_v27 }
 0x109   :  { %v1009_v9 = vadd.f32 %v945_v5, %v758_v7  ;;  %1087 = vst [vmem:[%s2185_s5 + $0x80] sm:$0xff] %v1023_v8  ;;  %1201 = vmatmul.msk.f32.gmra.mxu3 %vm537_vm1, %v529_v3  ;;  %v976_v3 = vld [vmem:[%s2184_s2 + $0x108] sm:$0xff] }
 0x10a   :  { %v992_v5 = vld [vmem:[%s2184_s2 + $0x188] sm:$0xff] }
 0x10b   :  { %1073 = vst [vmem:[%s2185_s5 + $0x10] sm:$0xff] %v1009_v9  ;;  %v964_v8 = vld [vmem:[%s2184_s2 + $0xa8] sm:$0xff] }
 0x10c   :  { %v802_v11 = vpop.f32.mrf.mxu1 }
 0x10d   :  { %v461_v13 = vpop.permute.xlu1 %460  ;;  %v381_v26 = vpop.permute.xlu0 %380  ;;  %v803_v14 = vadd.f32 %v1687_v35, %v802_v11 }
 0x10e   :  { %v530_v15 = vmul.f32 %v461_v13, %v82_v10  ;;  %v514_v18 = vmul.f32 %v381_v26, %v66_v6  ;;  %v760_v19 = vpop.f32.mrf.mxu0 }
 0x10f   :  { %v761_v21 = vadd.f32 %v1687_v35, %v760_v19  ;;  %v1024_v22 = vadd.f32 %v960_v12, %v803_v14  ;;  %v950_v12 = vld [vmem:[%s2184_s2 + $0x38] sm:$0xff]  ;;  %v977_v19 = vld [vmem:[%s2184_s2 + $0x110] sm:$0xff] }
 0x110   :  { %1186 = vmatmul.msk.f32.gmra.mxu2 %vm537_vm1, %v514_v18 }
 0x111   :  { %v1010_v46 = vadd.f32 %v946_v20, %v761_v21  ;;  %1088 = vst [vmem:[%s2185_s5 + $0x88] sm:$0xff] %v1024_v22  ;;  %1202 = vmatmul.msk.f32.gmra.mxu3 %vm537_vm1, %v530_v15  ;;  %v993_v22 = vld [vmem:[%s2184_s2 + $0x190] sm:$0xff] }
 0x113   :  { %1074 = vst [vmem:[%s2185_s5 + $0x18] sm:$0xff] %v1010_v46 }
 0x114   :  { %v805_v59 = vpop.f32.mrf.mxu1 }
 0x115   :  { %v466_v28 = vpop.permute.xlu1 %465  ;;  %v386_v29 = vpop.permute.xlu0 %385  ;;  %v806_v30 = vadd.f32 %v1687_v35, %v805_v59 }
 0x116   :  { %v531_v31 = vmul.f32 %v466_v28, %v83_v23  ;;  %v515_v32 = vmul.f32 %v386_v29, %v67_v24  ;;  %v763_v33 = vpop.f32.mrf.mxu0  ;;  %v965_v23 = vld [vmem:[%s2184_s2 + $0xb0] sm:$0xff]  ;;  %v951_v29 = vld [vmem:[%s2184_s2 + $0x40] sm:$0xff] }
 0x117   :  { %v764_v17 = vadd.f32 %v1687_v35, %v763_v33  ;;  %v1025_v36 = vadd.f32 %v961_v25, %v806_v30 }
 0x118   :  { %1187 = vmatmul.msk.f32.gmra.mxu2 %vm537_vm1, %v515_v32 }
 0x119   :  { %v1011_v37 = vadd.f32 %v947_v34, %v764_v17  ;;  %1089 = vst [vmem:[%s2185_s5 + $0x90] sm:$0xff] %v1025_v36  ;;  %1203 = vmatmul.msk.f32.gmra.mxu3 %vm537_vm1, %v531_v31  ;;  %v978_v17 = vld [vmem:[%s2184_s2 + $0x118] sm:$0xff] }
 0x11b   :  { %1075 = vst [vmem:[%s2185_s5 + $0x20] sm:$0xff] %v1011_v37 }
 0x11c   :  { %v808_v39 = vpop.f32.mrf.mxu1 }
 0x11d   :  { %v306_v41 = vpop.permute.xlu0 %305  ;;  %v809_v43 = vadd.f32 %v1687_v35, %v808_v39 }
 0x11e   :  { %v499_v44 = vmul.f32 %v306_v41, %v51_v38  ;;  %v766_v45 = vpop.f32.mrf.mxu0  ;;  %v994_v38 = vld [vmem:[%s2184_s2 + $0x198] sm:$0xff] }
 0x11f   :  { %v767_v42 = vadd.f32 %v1687_v35, %v766_v45  ;;  %v1026_v47 = vadd.f32 %v962_v40, %v809_v43  ;;  %v966_v40 = vld [vmem:[%s2184_s2 + $0xb8] sm:$0xff] }
 0x120   :  { %1171 = vmatmul.msk.f32.gmra.mxu1 %vm537_vm1, %v499_v44 }
 0x121   :  { %v1012_v48 = vadd.f32 %v948_v16, %v767_v42  ;;  %1090 = vst [vmem:[%s2185_s5 + $0x98] sm:$0xff] %v1026_v47  ;;  %v952_v16 = vld [vmem:[%s2184_s2 + $0x48] sm:$0xff] }
 0x123   :  { %1076 = vst [vmem:[%s2185_s5 + $0x28] sm:$0xff] %v1012_v48  ;;  %v847_v49 = vpop.f32.mrf.mxu2 }
 0x124   :  { %v848_v52 = vadd.f32 %v1687_v35, %v847_v49  ;;  %v895_v53 = vpop.f32.mrf.mxu3  ;;  %v811_v55 = vpop.f32.mrf.mxu1 }
 0x125   :  { %v896_v51 = vadd.f32 %v1687_v35, %v895_v53  ;;  %v812_v57 = vadd.f32 %v1687_v35, %v811_v55  ;;  %v995_v55 = vld [vmem:[%s2184_s2 + $0x1a0] sm:$0xff] }
 0x126   :  { %v1039_v58 = vadd.f32 %v975_v50, %v848_v52  ;;  %v769_v60 = vpop.f32.mrf.mxu0  ;;  %v979_v52 = vld [vmem:[%s2184_s2 + $0x120] sm:$0xff] }
 0x127   :  { %v1055_v62 = vadd.f32 %v991_v54, %v896_v51  ;;  %v770_v63 = vadd.f32 %v1687_v35, %v769_v60  ;;  %v1027_v0 = vadd.f32 %v963_v56, %v812_v57  ;;  %v967_v51 = vld [vmem:[%s2184_s2 + $0xc0] sm:$0xff] }
 0x128   :  { %1103 = vst [vmem:[%s2185_s5 + $0x100] sm:$0xff] %v1039_v58 }
 0x129   :  { %1119 = vst [vmem:[%s2185_s5 + $0x180] sm:$0xff] %v1055_v62  ;;  %v1013_v1 = vadd.f32 %v949_v61, %v770_v63  ;;  %v953_v62 = vld [vmem:[%s2184_s2 + $0x50] sm:$0xff] }
 0x12a   :  { %1091 = vst [vmem:[%s2185_s5 + $0xa0] sm:$0xff] %v1027_v0 }
 0x12b   :  { %1077 = vst [vmem:[%s2185_s5 + $0x30] sm:$0xff] %v1013_v1  ;;  %v850_v2 = vpop.f32.mrf.mxu2 }
 0x12c   :  { %v851_v27 = vadd.f32 %v1687_v35, %v850_v2  ;;  %v898_v4 = vpop.f32.mrf.mxu3  ;;  %v814_v7 = vpop.f32.mrf.mxu1 }
 0x12d   :  { %v899_v9 = vadd.f32 %v1687_v35, %v898_v4  ;;  %v815_v10 = vadd.f32 %v1687_v35, %v814_v7  ;;  %v996_v7 = vld [vmem:[%s2184_s2 + $0x1a8] sm:$0xff] }
 0x12e   :  { %v1040_v6 = vadd.f32 %v976_v3, %v851_v27  ;;  %v772_v11 = vpop.f32.mrf.mxu0  ;;  %v980_v27 = vld [vmem:[%s2184_s2 + $0x128] sm:$0xff] }
 0x12f   :  { %v1056_v13 = vadd.f32 %v992_v5, %v899_v9  ;;  %v773_v26 = vadd.f32 %v1687_v35, %v772_v11  ;;  %v1028_v14 = vadd.f32 %v964_v8, %v815_v10  ;;  %v968_v9 = vld [vmem:[%s2184_s2 + $0xc8] sm:$0xff] }
 0x130   :  { %1104 = vst [vmem:[%s2185_s5 + $0x108] sm:$0xff] %v1040_v6 }
 0x131   :  { %1120 = vst [vmem:[%s2185_s5 + $0x188] sm:$0xff] %v1056_v13  ;;  %v1014_v15 = vadd.f32 %v950_v12, %v773_v26  ;;  %v954_v13 = vld [vmem:[%s2184_s2 + $0x58] sm:$0xff] }
 0x132   :  { %1092 = vst [vmem:[%s2185_s5 + $0xa8] sm:$0xff] %v1028_v14 }
 0x133   :  { %1078 = vst [vmem:[%s2185_s5 + $0x38] sm:$0xff] %v1014_v15  ;;  %v853_v18 = vpop.f32.mrf.mxu2 }
 0x134   :  { %v854_v20 = vadd.f32 %v1687_v35, %v853_v18  ;;  %v901_v21 = vpop.f32.mrf.mxu3  ;;  %v817_v46 = vpop.f32.mrf.mxu1 }
 0x135   :  { %v902_v24 = vadd.f32 %v1687_v35, %v901_v21  ;;  %v818_v59 = vadd.f32 %v1687_v35, %v817_v46  ;;  %v997_v46 = vld [vmem:[%s2184_s2 + $0x1b0] sm:$0xff] }
 0x136   :  { %v1041_v25 = vadd.f32 %v977_v19, %v854_v20  ;;  %v775_v28 = vpop.f32.mrf.mxu0  ;;  %v981_v20 = vld [vmem:[%s2184_s2 + $0x130] sm:$0xff] }
 0x137   :  { %v1057_v30 = vadd.f32 %v993_v22, %v902_v24  ;;  %v776_v31 = vadd.f32 %v1687_v35, %v775_v28  ;;  %v1029_v32 = vadd.f32 %v965_v23, %v818_v59  ;;  %v969_v24 = vld [vmem:[%s2184_s2 + $0xd0] sm:$0xff] }
 0x138   :  { %1105 = vst [vmem:[%s2185_s5 + $0x110] sm:$0xff] %v1041_v25 }
 0x139   :  { %1121 = vst [vmem:[%s2185_s5 + $0x190] sm:$0xff] %v1057_v30  ;;  %v1015_v33 = vadd.f32 %v951_v29, %v776_v31  ;;  %v955_v30 = vld [vmem:[%s2184_s2 + $0x60] sm:$0xff] }
 0x13a   :  { %1093 = vst [vmem:[%s2185_s5 + $0xb0] sm:$0xff] %v1029_v32 }
 0x13b   :  { %1079 = vst [vmem:[%s2185_s5 + $0x40] sm:$0xff] %v1015_v33  ;;  %v856_v34 = vpop.f32.mrf.mxu2 }
 0x13c   :  { %v857_v36 = vadd.f32 %v1687_v35, %v856_v34  ;;  %v904_v37 = vpop.f32.mrf.mxu3  ;;  %v820_v39 = vpop.f32.mrf.mxu1 }
 0x13d   :  { %v905_v41 = vadd.f32 %v1687_v35, %v904_v37  ;;  %v821_v43 = vadd.f32 %v1687_v35, %v820_v39  ;;  %v998_v39 = vld [vmem:[%s2184_s2 + $0x1b8] sm:$0xff] }
 0x13e   :  { %v1042_v44 = vadd.f32 %v978_v17, %v857_v36  ;;  %v778_v45 = vpop.f32.mrf.mxu0  ;;  %v982_v36 = vld [vmem:[%s2184_s2 + $0x138] sm:$0xff] }
 0x13f   :  { %v1058_v42 = vadd.f32 %v994_v38, %v905_v41  ;;  %v779_v47 = vadd.f32 %v1687_v35, %v778_v45  ;;  %v1030_v48 = vadd.f32 %v966_v40, %v821_v43  ;;  %v970_v41 = vld [vmem:[%s2184_s2 + $0xd8] sm:$0xff] }
 0x140   :  { %1106 = vst [vmem:[%s2185_s5 + $0x118] sm:$0xff] %v1042_v44 }
 0x141   :  { %1122 = vst [vmem:[%s2185_s5 + $0x198] sm:$0xff] %v1058_v42  ;;  %v1016_v49 = vadd.f32 %v952_v16, %v779_v47  ;;  %v956_v42 = vld [vmem:[%s2184_s2 + $0x68] sm:$0xff] }
 0x142   :  { %1094 = vst [vmem:[%s2185_s5 + $0xb8] sm:$0xff] %v1030_v48 }
 0x143   :  { %1080 = vst [vmem:[%s2185_s5 + $0x48] sm:$0xff] %v1016_v49  ;;  %v859_v50 = vpop.f32.mrf.mxu2 }
 0x144   :  { %v860_v53 = vadd.f32 %v1687_v35, %v859_v50  ;;  %v907_v54 = vpop.f32.mrf.mxu3  ;;  %v823_v56 = vpop.f32.mrf.mxu1 }
 0x145   :  { %v908_v57 = vadd.f32 %v1687_v35, %v907_v54  ;;  %v824_v58 = vadd.f32 %v1687_v35, %v823_v56  ;;  %v999_v56 = vld [vmem:[%s2184_s2 + $0x1c0] sm:$0xff] }
 0x146   :  { %v1043_v60 = vadd.f32 %v979_v52, %v860_v53  ;;  %v781_v61 = vpop.f32.mrf.mxu0  ;;  %v983_v53 = vld [vmem:[%s2184_s2 + $0x140] sm:$0xff] }
 0x147   :  { %v1059_v63 = vadd.f32 %v995_v55, %v908_v57  ;;  %v782_v0 = vadd.f32 %v1687_v35, %v781_v61  ;;  %v1031_v1 = vadd.f32 %v967_v51, %v824_v58  ;;  %v971_v57 = vld [vmem:[%s2184_s2 + $0xe0] sm:$0xff] }
 0x148   :  { %1107 = vst [vmem:[%s2185_s5 + $0x120] sm:$0xff] %v1043_v60 }
 0x149   :  { %1123 = vst [vmem:[%s2185_s5 + $0x1a0] sm:$0xff] %v1059_v63  ;;  %v1017_v2 = vadd.f32 %v953_v62, %v782_v0  ;;  %v957_v63 = vld [vmem:[%s2184_s2 + $0x70] sm:$0xff] }
 0x14a   :  { %1095 = vst [vmem:[%s2185_s5 + $0xc0] sm:$0xff] %v1031_v1 }
 0x14b   :  { %1081 = vst [vmem:[%s2185_s5 + $0x50] sm:$0xff] %v1017_v2  ;;  %v862_v3 = vpop.f32.mrf.mxu2 }
 0x14c   :  { %v863_v4 = vadd.f32 %v1687_v35, %v862_v3  ;;  %v910_v5 = vpop.f32.mrf.mxu3  ;;  %v826_v8 = vpop.f32.mrf.mxu1 }
 0x14d   :  { %v911_v10 = vadd.f32 %v1687_v35, %v910_v5  ;;  %v827_v6 = vadd.f32 %v1687_v35, %v826_v8  ;;  %v1000_v8 = vld [vmem:[%s2184_s2 + $0x1c8] sm:$0xff] }
 0x14e   :  { %v1044_v11 = vadd.f32 %v980_v27, %v863_v4  ;;  %v784_v12 = vpop.f32.mrf.mxu0  ;;  %v984_v4 = vld [vmem:[%s2184_s2 + $0x148] sm:$0xff] }
 0x14f   :  { %v1060_v26 = vadd.f32 %v996_v7, %v911_v10  ;;  %v785_v14 = vadd.f32 %v1687_v35, %v784_v12  ;;  %v1032_v15 = vadd.f32 %v968_v9, %v827_v6  ;;  %v972_v10 = vld [vmem:[%s2184_s2 + $0xe8] sm:$0xff] }
 0x150   :  { %1108 = vst [vmem:[%s2185_s5 + $0x128] sm:$0xff] %v1044_v11 }
 0x151   :  { %1124 = vst [vmem:[%s2185_s5 + $0x1a8] sm:$0xff] %v1060_v26  ;;  %v1018_v18 = vadd.f32 %v954_v13, %v785_v14 }
 0x152   :  { %1096 = vst [vmem:[%s2185_s5 + $0xc8] sm:$0xff] %v1032_v15  ;;  %v985_v15 = vld [vmem:[%s2184_s2 + $0x150] sm:$0xff] }
 0x153   :  { %1082 = vst [vmem:[%s2185_s5 + $0x58] sm:$0xff] %v1018_v18  ;;  %v865_v19 = vpop.f32.mrf.mxu2 }
 0x154   :  { %v866_v21 = vadd.f32 %v1687_v35, %v865_v19  ;;  %v913_v22 = vpop.f32.mrf.mxu3  ;;  %v829_v23 = vpop.f32.mrf.mxu1 }
 0x155   :  { %v914_v59 = vadd.f32 %v1687_v35, %v913_v22  ;;  %v830_v25 = vadd.f32 %v1687_v35, %v829_v23  ;;  %v973_v22 = vld [vmem:[%s2184_s2 + $0xf0] sm:$0xff] }
 0x156   :  { %v1045_v28 = vadd.f32 %v981_v20, %v866_v21  ;;  %v787_v29 = vpop.f32.mrf.mxu0  ;;  %v1001_v20 = vld [vmem:[%s2184_s2 + $0x1d0] sm:$0xff] }
 0x157   :  { %v1061_v31 = vadd.f32 %v997_v46, %v914_v59  ;;  %v788_v32 = vadd.f32 %v1687_v35, %v787_v29  ;;  %v1033_v33 = vadd.f32 %v969_v24, %v830_v25  ;;  %v986_v29 = vld [vmem:[%s2184_s2 + $0x158] sm:$0xff] }
 0x158   :  { %1109 = vst [vmem:[%s2185_s5 + $0x130] sm:$0xff] %v1045_v28 }
 0x159   :  { %1125 = vst [vmem:[%s2185_s5 + $0x1b0] sm:$0xff] %v1061_v31  ;;  %v1019_v34 = vadd.f32 %v955_v30, %v788_v32  ;;  %v1002_v32 = vld [vmem:[%s2184_s2 + $0x1d8] sm:$0xff] }
 0x15a   :  { %1097 = vst [vmem:[%s2185_s5 + $0xd0] sm:$0xff] %v1033_v33 }
 0x15b   :  { %1083 = vst [vmem:[%s2185_s5 + $0x60] sm:$0xff] %v1019_v34  ;;  %v868_v17 = vpop.f32.mrf.mxu2  ;;  %v958_v34 = vld [vmem:[%s2184_s2 + $0x78] sm:$0xff] }
 0x15c   :  { %v869_v37 = vadd.f32 %v1687_v35, %v868_v17  ;;  %v916_v38 = vpop.f32.mrf.mxu3  ;;  %v832_v40 = vpop.f32.mrf.mxu1 }
 0x15d   :  { %v917_v43 = vadd.f32 %v1687_v35, %v916_v38  ;;  %v833_v44 = vadd.f32 %v1687_v35, %v832_v40 }
 0x15e   :  { %v1046_v45 = vadd.f32 %v982_v36, %v869_v37  ;;  %v790_v16 = vpop.f32.mrf.mxu0 }
 0x15f   :  { %v1062_v47 = vadd.f32 %v998_v39, %v917_v43  ;;  %v791_v48 = vadd.f32 %v1687_v35, %v790_v16  ;;  %v1034_v49 = vadd.f32 %v970_v41, %v833_v44  ;;  %v987_v41 = vld [vmem:[%s2184_s2 + $0x160] sm:$0xff] }
 0x160   :  { %1110 = vst [vmem:[%s2185_s5 + $0x138] sm:$0xff] %v1046_v45  ;;  %v1003_v45 = vld [vmem:[%s2184_s2 + $0x1e0] sm:$0xff] }
 0x161   :  { %1126 = vst [vmem:[%s2185_s5 + $0x1b8] sm:$0xff] %v1062_v47  ;;  %v1020_v50 = vadd.f32 %v956_v42, %v791_v48 }
 0x162   :  { %1098 = vst [vmem:[%s2185_s5 + $0xd8] sm:$0xff] %v1034_v49  ;;  %v988_v49 = vld [vmem:[%s2184_s2 + $0x168] sm:$0xff] }
 0x163   :  { %1084 = vst [vmem:[%s2185_s5 + $0x68] sm:$0xff] %v1020_v50  ;;  %v871_v52 = vpop.f32.mrf.mxu2 }
 0x164   :  { %v872_v54 = vadd.f32 %v1687_v35, %v871_v52  ;;  %v919_v55 = vpop.f32.mrf.mxu3  ;;  %v835_v51 = vpop.f32.mrf.mxu1 }
 0x165   :  { %v920_v58 = vadd.f32 %v1687_v35, %v919_v55  ;;  %v836_v60 = vadd.f32 %v1687_v35, %v835_v51 }
 0x166   :  { %v1047_v61 = vadd.f32 %v983_v53, %v872_v54  ;;  %v793_v62 = vpop.f32.mrf.mxu0  ;;  %v1004_v53 = vld [vmem:[%s2184_s2 + $0x1e8] sm:$0xff] }
 0x167   :  { %v1063_v0 = vadd.f32 %v999_v56, %v920_v58  ;;  %v794_v1 = vadd.f32 %v1687_v35, %v793_v62  ;;  %v1035_v2 = vadd.f32 %v971_v57, %v836_v60  ;;  %v989_v57 = vld [vmem:[%s2184_s2 + $0x170] sm:$0xff] }
 0x168   :  { %1111 = vst [vmem:[%s2185_s5 + $0x140] sm:$0xff] %v1047_v61  ;;  %v1005_v61 = vld [vmem:[%s2184_s2 + $0x1f0] sm:$0xff] }
 0x169   :  { %1127 = vst [vmem:[%s2185_s5 + $0x1c0] sm:$0xff] %v1063_v0  ;;  %v1021_v3 = vadd.f32 %v957_v63, %v794_v1 }
 0x16a   :  { %1099 = vst [vmem:[%s2185_s5 + $0xe0] sm:$0xff] %v1035_v2  ;;  %v990_v2 = vld [vmem:[%s2184_s2 + $0x178] sm:$0xff] }
 0x16b   :  { %1085 = vst [vmem:[%s2185_s5 + $0x70] sm:$0xff] %v1021_v3  ;;  %v874_v27 = vpop.f32.mrf.mxu2 }
 0x16c   :  { %v875_v5 = vadd.f32 %v1687_v35, %v874_v27  ;;  %v922_v7 = vpop.f32.mrf.mxu3  ;;  %v838_v9 = vpop.f32.mrf.mxu1 }
 0x16d   :  { %v923_v6 = vadd.f32 %v1687_v35, %v922_v7  ;;  %v839_v11 = vadd.f32 %v1687_v35, %v838_v9 }
 0x16e   :  { %v1048_v12 = vadd.f32 %v984_v4, %v875_v5  ;;  %v1006_v4 = vld [vmem:[%s2184_s2 + $0x1f8] sm:$0xff] }
 0x16f   :  { %v1064_v13 = vadd.f32 %v1000_v8, %v923_v6  ;;  %v1036_v26 = vadd.f32 %v972_v10, %v839_v11  ;;  %v974_v8 = vld [vmem:[%s2184_s2 + $0xf8] sm:$0xff] }
 0x170   :  { %1112 = vst [vmem:[%s2185_s5 + $0x148] sm:$0xff] %v1048_v12 }
 0x171   :  { %1128 = vst [vmem:[%s2185_s5 + $0x1c8] sm:$0xff] %v1064_v13 }
 0x172   :  { %1100 = vst [vmem:[%s2185_s5 + $0xe8] sm:$0xff] %v1036_v26 }
 0x173   :  { %v877_v14 = vpop.f32.mrf.mxu2 }
 0x174   :  { %v878_v18 = vadd.f32 %v1687_v35, %v877_v14  ;;  %v925_v19 = vpop.f32.mrf.mxu3  ;;  %v841_v21 = vpop.f32.mrf.mxu1 }
 0x175   :  { %v926_v46 = vadd.f32 %v1687_v35, %v925_v19  ;;  %v842_v23 = vadd.f32 %v1687_v35, %v841_v21 }
 0x176   :  { %v1049_v24 = vadd.f32 %v985_v15, %v878_v18 }
 0x177   :  { %v1065_v59 = vadd.f32 %v1001_v20, %v926_v46  ;;  %v1037_v25 = vadd.f32 %v973_v22, %v842_v23 }
 0x178   :  { %1113 = vst [vmem:[%s2185_s5 + $0x150] sm:$0xff] %v1049_v24 }
 0x179   :  { %1129 = vst [vmem:[%s2185_s5 + $0x1d0] sm:$0xff] %v1065_v59 }
 0x17a   :  { %1101 = vst [vmem:[%s2185_s5 + $0xf0] sm:$0xff] %v1037_v25 }
 0x17b   :  { %v880_v28 = vpop.f32.mrf.mxu2 }
 0x17c   :  { %v881_v30 = vadd.f32 %v1687_v35, %v880_v28  ;;  %v928_v31 = vpop.f32.mrf.mxu3  ;;  %v796_v33 = vpop.f32.mrf.mxu0 }
 0x17d   :  { %v929_v17 = vadd.f32 %v1687_v35, %v928_v31  ;;  %v797_v36 = vadd.f32 %v1687_v35, %v796_v33 }
 0x17e   :  { %v1050_v37 = vadd.f32 %v986_v29, %v881_v30 }
 0x17f   :  { %v1066_v38 = vadd.f32 %v1002_v32, %v929_v17  ;;  %v1022_v39 = vadd.f32 %v958_v34, %v797_v36 }
 0x180   :  { %1114 = vst [vmem:[%s2185_s5 + $0x158] sm:$0xff] %v1050_v37 }
 0x181   :  { %1130 = vst [vmem:[%s2185_s5 + $0x1d8] sm:$0xff] %v1066_v38 }
 0x182   :  { %1086 = vst [vmem:[%s2185_s5 + $0x78] sm:$0xff] %v1022_v39 }
 0x183   :  { %v883_v40 = vpop.f32.mrf.mxu2 }
 0x184   :  { %v884_v43 = vadd.f32 %v1687_v35, %v883_v40  ;;  %v931_v44 = vpop.f32.mrf.mxu3 }
 0x185   :  { %v932_v16 = vadd.f32 %v1687_v35, %v931_v44 }
 0x186   :  { %v1051_v42 = vadd.f32 %v987_v41, %v884_v43 }
 0x187   :  { %v1067_v47 = vadd.f32 %v1003_v45, %v932_v16 }
 0x188   :  { %1115 = vst [vmem:[%s2185_s5 + $0x160] sm:$0xff] %v1051_v42 }
 0x189   :  { %1131 = vst [vmem:[%s2185_s5 + $0x1e0] sm:$0xff] %v1067_v47 }
 0x18b   :  { %v886_v48 = vpop.f32.mrf.mxu2 }
 0x18c   :  { %v887_v50 = vadd.f32 %v1687_v35, %v886_v48  ;;  %v934_v52 = vpop.f32.mrf.mxu3 }
 0x18d   :  { %v935_v54 = vadd.f32 %v1687_v35, %v934_v52 }
 0x18e   :  { %v1052_v55 = vadd.f32 %v988_v49, %v887_v50 }
 0x18f   :  { %v1068_v56 = vadd.f32 %v1004_v53, %v935_v54 }
 0x190   :  { %1116 = vst [vmem:[%s2185_s5 + $0x168] sm:$0xff] %v1052_v55 }
 0x191   :  { %1132 = vst [vmem:[%s2185_s5 + $0x1e8] sm:$0xff] %v1068_v56 }
 0x193   :  { %v889_v51 = vpop.f32.mrf.mxu2 }
 0x194   :  { %v890_v58 = vadd.f32 %v1687_v35, %v889_v51  ;;  %v937_v60 = vpop.f32.mrf.mxu3 }
 0x195   :  { %v938_v62 = vadd.f32 %v1687_v35, %v937_v60 }
 0x196   :  { %v1053_v63 = vadd.f32 %v989_v57, %v890_v58 }
 0x197   :  { %v1069_v0 = vadd.f32 %v1005_v61, %v938_v62 }
 0x198   :  { %1117 = vst [vmem:[%s2185_s5 + $0x170] sm:$0xff] %v1053_v63 }
 0x199   :  { %1133 = vst [vmem:[%s2185_s5 + $0x1f0] sm:$0xff] %v1069_v0 }
 0x19b   :  { %v892_v1 = vpop.f32.mrf.mxu2 }
 0x19c   :  { %v893_v3 = vadd.f32 %v1687_v35, %v892_v1  ;;  %v940_v27 = vpop.f32.mrf.mxu3 }
 0x19d   :  { %v941_v5 = vadd.f32 %v1687_v35, %v940_v27  ;;  %v844_v7 = vpop.f32.mrf.mxu1 }
 0x19e   :  { %v1054_v9 = vadd.f32 %v990_v2, %v893_v3  ;;  %v845_v10 = vadd.f32 %v1687_v35, %v844_v7 }
 0x19f   :  { %v1070_v6 = vadd.f32 %v1006_v4, %v941_v5 }
 0x1a0   :  { %1118 = vst [vmem:[%s2185_s5 + $0x178] sm:$0xff] %v1054_v9  ;;  %v1038_v11 = vadd.f32 %v974_v8, %v845_v10 }
 0x1a1   :  { %1134 = vst [vmem:[%s2185_s5 + $0x1f8] sm:$0xff] %v1070_v6 }
 0x1a2   :  { %1102 = vst [vmem:[%s2185_s5 + $0xf8] sm:$0xff] %v1038_v11 }

</bundles_post_ra>
